<compile_context>
chip_gen: v5e
topology: v5e:2x2
jax: 0.10.0
libtpu: 0.0.40
codegen_flags: <defaults>
</compile_context>

<pallas_src>
import math
import jax
import jax.numpy as jnp
from jax import lax
from jax.experimental import pallas as pl
from jax.experimental.pallas import tpu as pltpu

DIM = 32                     # model dim C
HEADS = 4                    # num_heads
HEAD_DIM = DIM // HEADS
MLP_HIDDEN = int(DIM * 4.0)  # mlp_ratio = 4.0
LN_EPS = 1e-5


def _erf(z):
    # Abramowitz & Stegun 7.1.26 polynomial, |err| ~1.5e-7 (~f32 precision).
    # TODO(synk): Mosaic has no guaranteed erf primitive; this reproduces exact
    # (erf-based) nn.GELU to float32 accuracy.
    p = 0.3275911
    a1, a2, a3, a4, a5 = 0.254829592, -0.284496736, 1.421413741, -1.453152027, 1.061405429
    az = jnp.abs(z)
    t = 1.0 / (1.0 + p * az)
    poly = ((((a5 * t + a4) * t + a3) * t + a2) * t + a1) * t
    y = 1.0 - poly * jnp.exp(-az * az)
    return jnp.where(z >= 0, y, -y)


def _gelu_exact(z):
    return 0.5 * z * (1.0 + _erf(z * 0.7071067811865476))


def _layer_norm(z, gamma, beta):
    mu = jnp.mean(z, axis=-1, keepdims=True)
    var = jnp.mean((z - mu) ** 2, axis=-1, keepdims=True)   # biased var, like torch
    return (z - mu) * lax.rsqrt(var + LN_EPS) * gamma + beta


def _make_kernel(bb, L):
    BL = bb * L   # tokens per grid step (bb batches folded onto the row axis)
    C = DIM

    def kernel(x_ref, pos_ref, bias_ref, cmat_ref,
               g1_ref, bt1_ref, wqkv_ref, bqkv_ref, wp_ref, bp_ref,
               g2_ref, bt2_ref, w1_ref, b1_ref, w2_ref, b2_ref,
               o_ref):
        x = x_ref[...]                                     # (BL, C)

        # ---------------- part 1: x*sqrt(dim) + pos-enc, LN1, MHSA ----------------
        xs = x * math.sqrt(DIM) + pos_ref[...]
        x1 = _layer_norm(xs, g1_ref[...], bt1_ref[...])

        # fused q/k/v projection (qk scale already folded into the q slice of wqkv/bqkv)
        qkv = jnp.dot(x1, wqkv_ref[...], preferred_element_type=jnp.float32) + bqkv_ref[...]
        q = qkv[:, 0 * C:1 * C]
        k = qkv[:, 1 * C:2 * C]
        v = qkv[:, 2 * C:3 * C]
        wp = wp_ref[...]
        attn_bias = bias_ref[...]      # block-diagonal: 0 within batch, -1e30 across batches

        ao = jnp.zeros((BL, C), jnp.float32)
        for h in range(HEADS):                             # static unroll over 4 heads
            s0 = h * HEAD_DIM
            qh = q[:, s0:s0 + HEAD_DIM]
            kh = k[:, s0:s0 + HEAD_DIM]
            vh = v[:, s0:s0 + HEAD_DIM]
            s = lax.dot_general(qh, kh, (((1,), (1,)), ((), ())),
                                preferred_element_type=jnp.float32) + attn_bias
            s = s - jnp.max(s, axis=-1, keepdims=True)     # softmax (shift-invariant)
            e = jnp.exp(s)
            # exact divide kept for parity with torch softmax (kernel is overhead-bound,
            # so EUP approx-reciprocal is not the binding slot here).
            p = e / jnp.sum(e, axis=-1, keepdims=True)
            oh = jnp.dot(p, vh, preferred_element_type=jnp.float32)
            # accumulate output projection per head -> no head concat / head-major buffer
            ao = ao + jnp.dot(oh, wp[s0:s0 + HEAD_DIM, :],
                              preferred_element_type=jnp.float32)
        ao = ao + bp_ref[...]

        x2 = x + ao                                        # first residual (drop_path = Id)

        # ------- part 2: LN2, fc1 -> GELU -> partial conv1d -> GELU -> fc2 --------
        y = _layer_norm(x2, g2_ref[...], bt2_ref[...])
        hdn = jnp.dot(y, w1_ref[...], preferred_element_type=jnp.float32) + b1_ref[...]
        hdn = _gelu_exact(hdn)                             # (BL, H)

        # PartialConv_1d(hidden, n_div=hidden): only hidden-channel 0 is convolved along
        # the sequence (kernel 3, stride 1, padding 1, no bias).  cmat is a precomputed
        # boundary-aware tri-diagonal (BL, BL) matrix; apply it to the whole lane-dense
        # (BL, H) slab in one MXU dot, then keep only channel 0 of the result.
        conv_all = jnp.dot(cmat_ref[...], hdn, preferred_element_type=jnp.float32)
        lanes = lax.broadcasted_iota(jnp.int32, hdn.shape, 1)
        hdn = jnp.where(lanes == 0, conv_all, hdn)         # overwrite hidden-channel 0 only
        hdn = _gelu_exact(hdn)                             # second act (all channels)

        ffn = jnp.dot(hdn, w2_ref[...], preferred_element_type=jnp.float32) + b2_ref[...]

        o_ref[...] = x2 + ffn                              # second residual (drop_path = Id)

    return kernel


def transformer_block(x, params, batch_block=None):
    """batch_block: batches folded per grid step (default: all).  On v7x with larger B,
    set batch_block=B//2 to shard the ('parallel') grid across the two TensorCores."""
    B, L, C = x.shape
    assert C == DIM
    bb = B if batch_block is None else batch_block
    assert B % bb == 0
    BL = bb * L
    H = MLP_HIDDEN

    # --- one-time weight / plumbing transforms (plain JAX, outside the kernel) ---
    scale = HEAD_DIM ** (-0.5)
    wqkv = jnp.concatenate([params["wq"] * scale, params["wkv"]], axis=1)   # (C, 3C)
    bqkv = jnp.concatenate([params["bq"] * scale, params["bkv"]], axis=1)   # (1, 3C)
    pos = jnp.tile(params["pos"], (bb, 1))                 # pos replicated over folded batches

    r = jnp.arange(BL)
    same_batch = (r[:, None] // L) == (r[None, :] // L)
    attn_bias = jnp.where(same_batch, 0.0, -1e30).astype(jnp.float32)       # (BL, BL)
    diff = r[None, :] - r[:, None]                         # col(index s) - row(index t)
    wc = params["wc"]                                      # Conv1d(1,1,3) weights
    conv_mat = (jnp.where((diff == -1) & same_batch, wc[0], 0.0)
                + jnp.where(diff == 0, wc[1], 0.0)
                + jnp.where((diff == 1) & same_batch, wc[2], 0.0)).astype(jnp.float32)

    x2d = x.reshape(B * L, C)                              # fold batch into the token axis

    def full_spec(shape):
        nd = len(shape)
        return pl.BlockSpec(shape, lambda i, _nd=nd: (0,) * _nd)

    in_specs = [
        pl.BlockSpec((BL, C), lambda i: (i, 0)),           # x slab (bb batches of tokens)
        full_spec((BL, C)),                                # positional encoding (tiled)
        full_spec((BL, BL)),                               # block-diagonal attention bias
        full_spec((BL, BL)),                               # partial-conv shift matrix
        full_spec((1, C)), full_spec((1, C)),              # LN1 gamma, beta
        full_spec((C, 3 * C)), full_spec((1, 3 * C)),      # fused Wqkv (scaled), bqkv
        full_spec((C, C)), full_spec((1, C)),              # Wproj, bproj
        full_spec((1, C)), full_spec((1, C)),              # LN2 gamma, beta
        full_spec((C, H)), full_spec((1, H)),              # W1, b1
        full_spec((H, C)), full_spec((1, C)),              # W2, b2
    ]
    out_spec = pl.BlockSpec((BL, C), lambda i: (i, 0))

    # TODO(synk): output is token-major (B*L, 32) -> masked 32-lane stores; a lane-dense
    # (B, L*C) layout would need an in-kernel sublane<->lane relayout for a 2 KiB output,
    # not worth it at these shapes.
    out2d = pl.pallas_call(
        _make_kernel(bb, L),
        out_shape=jax.ShapeDtypeStruct((B * L, C), jnp.float32),
        grid_spec=pltpu.PrefetchScalarGridSpec(
            num_scalar_prefetch=0,
            grid=(B // bb,),
            in_specs=in_specs,
            out_specs=out_spec,
        ),
        compiler_params=pltpu.CompilerParams(dimension_semantics=("parallel",)),
    )(x2d, pos, attn_bias, conv_mat,
      params["g1"], params["bt1"], wqkv, bqkv, params["wp"], params["bp"],
      params["g2"], params["bt2"],
      params["w1"], params["b1"], params["w2"], params["b2"])
    return out2d.reshape(B, L, C)


# ------------------------- pure-JAX reference (for checking) -------------------------
def transformer_block_ref(x, params):
    B, L, C = x.shape
    hp = lax.Precision.HIGHEST
    scale = HEAD_DIM ** (-0.5)

    def ln(z, g, b):
        mu = jnp.mean(z, -1, keepdims=True)
        var = jnp.mean((z - mu) ** 2, -1, keepdims=True)
        return (z - mu) / jnp.sqrt(var + LN_EPS) * g + b

    xs = x * math.sqrt(C) + params["pos"][None]
    x1 = ln(xs, params["g1"], params["bt1"])
    q = jnp.einsum("blc,cd->bld", x1, params["wq"], precision=hp) + params["bq"]
    kv = jnp.einsum("blc,cd->bld", x1, params["wkv"], precision=hp) + params["bkv"]
    k, v = kv[..., :C], kv[..., C:]

    def split(t):
        return t.reshape(B, L, HEADS, HEAD_DIM).transpose(0, 2, 1, 3)

    qh, kh, vh = split(q) * scale, split(k), split(v)
    att = jnp.einsum("bhld,bhmd->bhlm", qh, kh, precision=hp)
    att = jax.nn.softmax(att, axis=-1)
    o = jnp.einsum("bhlm,bhmd->bhld", att, vh, precision=hp)
    o = o.transpose(0, 2, 1, 3).reshape(B, L, C)
    o = jnp.einsum("blc,cd->bld", o, params["wp"], precision=hp) + params["bp"]
    x2 = x + o

    y = ln(x2, params["g2"], params["bt2"])
    h = jnp.einsum("blc,ch->blh", y, params["w1"], precision=hp) + params["b1"]
    h = jax.nn.gelu(h, approximate=False)
    c0 = h[..., 0]                                            # (B, L): hidden-channel 0
    c0p = jnp.pad(c0, ((0, 0), (1, 1)))
    wc = params["wc"]
    c0c = wc[0] * c0p[:, :-2] + wc[1] * c0p[:, 1:-1] + wc[2] * c0p[:, 2:]
    h = h.at[..., 0].set(c0c)
    h = jax.nn.gelu(h, approximate=False)
    ffn = jnp.einsum("blh,hc->blc", h, params["w2"], precision=hp) + params["b2"]
    return x2 + ffn


def abs_pos_encoding(L, C):
    # Matches AbsPositionalEncoding.P[:, :L, :]
    position = jnp.arange(L, dtype=jnp.float32)[:, None]
    div = jnp.power(10000.0, jnp.arange(0, C, 2, dtype=jnp.float32) / C)
    X = position / div
    P = jnp.zeros((L, C), jnp.float32)
    P = P.at[:, 0::2].set(jnp.sin(X))
    P = P.at[:, 1::2].set(jnp.cos(X))
    return P


def init_params(L, C, H, key):
    ks = jax.random.split(key, 12)
    n = lambda k, shape, s=0.05: jax.random.normal(k, shape, jnp.float32) * s
    return {
        "pos": abs_pos_encoding(L, C),
        "g1": 1.0 + n(ks[0], (1, C), 0.01),
        "bt1": n(ks[1], (1, C), 0.01),
        "wq": n(ks[2], (C, C)), "bq": n(ks[3], (1, C), 0.01),
        "wkv": n(ks[4], (C, 2 * C)), "bkv": n(ks[5], (1, 2 * C), 0.01),
        "wp": n(ks[6], (C, C)), "bp": n(ks[7], (1, C), 0.01),
        "g2": 1.0 + n(ks[8], (1, C), 0.01),
        "bt2": n(ks[9], (1, C), 0.01),
        "w1": n(ks[10], (C, H)), "b1": n(ks[11], (1, H), 0.01),
        "w2": n(jax.random.fold_in(key, 100), (H, C)),
        "b2": n(jax.random.fold_in(key, 101), (1, C), 0.01),
        "wc": n(jax.random.fold_in(key, 102), (3,), 0.3),
    }


if __name__ == "__main__":
    B, L, C = 2, 8, DIM
    x = jax.random.normal(jax.random.PRNGKey(0), (B, L, C), jnp.float32)
    params = init_params(L, C, MLP_HIDDEN, jax.random.PRNGKey(42))

    out = jax.block_until_ready(transformer_block(x, params))
    assert out.shape == (B, L, C) and out.dtype == jnp.float32
    assert bool(jnp.all(jnp.isfinite(out)))

    ref = jax.block_until_ready(transformer_block_ref(x, params))
    err = float(jnp.max(jnp.abs(out - ref)))
    assert err < 2e-2, f"kernel/reference mismatch: max abs err = {err}"

    print("KERNEL_OK")
</pallas_src>

<mosaic_0001>
module attributes {stable_mosaic.version = 11 : i64} {
  func.func @kernel(%arg0: i32, %arg1: memref<16x32xf32, #tpu.memory_space<vmem>>, %arg2: memref<16x32xf32, #tpu.memory_space<vmem>>, %arg3: memref<16x16xf32, #tpu.memory_space<vmem>>, %arg4: memref<16x16xf32, #tpu.memory_space<vmem>>, %arg5: memref<1x32xf32, #tpu.memory_space<vmem>>, %arg6: memref<1x32xf32, #tpu.memory_space<vmem>>, %arg7: memref<32x96xf32, #tpu.memory_space<vmem>>, %arg8: memref<1x96xf32, #tpu.memory_space<vmem>>, %arg9: memref<32x32xf32, #tpu.memory_space<vmem>>, %arg10: memref<1x32xf32, #tpu.memory_space<vmem>>, %arg11: memref<1x32xf32, #tpu.memory_space<vmem>>, %arg12: memref<1x32xf32, #tpu.memory_space<vmem>>, %arg13: memref<32x128xf32, #tpu.memory_space<vmem>>, %arg14: memref<1x128xf32, #tpu.memory_space<vmem>>, %arg15: memref<128x32xf32, #tpu.memory_space<vmem>>, %arg16: memref<1x32xf32, #tpu.memory_space<vmem>>, %arg17: memref<16x32xf32, #tpu.memory_space<vmem>>) attributes {dimension_semantics = [#tpu.dimension_semantics<parallel>], iteration_bounds = array<i64: 1>, scalar_prefetch = 0 : i64, scratch_operands = 0 : i64, tpu.core_type = #tpu.core_type<tc>, window_params = [{transform_indices = @transform_0, window_bounds = array<i64: 16, 32>}, {pipeline_mode = #tpu.pipeline_mode<synchronous>, transform_indices = @transform_1, window_bounds = array<i64: 16, 32>}, {pipeline_mode = #tpu.pipeline_mode<synchronous>, transform_indices = @transform_2, window_bounds = array<i64: 16, 16>}, {pipeline_mode = #tpu.pipeline_mode<synchronous>, transform_indices = @transform_3, window_bounds = array<i64: 16, 16>}, {pipeline_mode = #tpu.pipeline_mode<synchronous>, transform_indices = @transform_4, window_bounds = array<i64: 1, 32>}, {pipeline_mode = #tpu.pipeline_mode<synchronous>, transform_indices = @transform_5, window_bounds = array<i64: 1, 32>}, {pipeline_mode = #tpu.pipeline_mode<synchronous>, transform_indices = @transform_6, window_bounds = array<i64: 32, 96>}, {pipeline_mode = #tpu.pipeline_mode<synchronous>, transform_indices = @transform_7, window_bounds = array<i64: 1, 96>}, {pipeline_mode = #tpu.pipeline_mode<synchronous>, transform_indices = @transform_8, window_bounds = array<i64: 32, 32>}, {pipeline_mode = #tpu.pipeline_mode<synchronous>, transform_indices = @transform_9, window_bounds = array<i64: 1, 32>}, {pipeline_mode = #tpu.pipeline_mode<synchronous>, transform_indices = @transform_10, window_bounds = array<i64: 1, 32>}, {pipeline_mode = #tpu.pipeline_mode<synchronous>, transform_indices = @transform_11, window_bounds = array<i64: 1, 32>}, {pipeline_mode = #tpu.pipeline_mode<synchronous>, transform_indices = @transform_12, window_bounds = array<i64: 32, 128>}, {pipeline_mode = #tpu.pipeline_mode<synchronous>, transform_indices = @transform_13, window_bounds = array<i64: 1, 128>}, {pipeline_mode = #tpu.pipeline_mode<synchronous>, transform_indices = @transform_14, window_bounds = array<i64: 128, 32>}, {pipeline_mode = #tpu.pipeline_mode<synchronous>, transform_indices = @transform_15, window_bounds = array<i64: 1, 32>}, {transform_indices = @transform_16, window_bounds = array<i64: 16, 32>}]} {
    %c0 = arith.constant 0 : index
    %c0_0 = arith.constant 0 : index
    %0 = vector.load %arg1[%c0, %c0_0] : memref<16x32xf32, #tpu.memory_space<vmem>>, vector<16x32xf32>
    %cst = arith.constant 5.65685415 : f32
    %1 = vector.broadcast %cst : f32 to vector<16x32xf32>
    %2 = arith.mulf %0, %1 : vector<16x32xf32>
    %c0_1 = arith.constant 0 : index
    %c0_2 = arith.constant 0 : index
    %3 = vector.load %arg2[%c0_1, %c0_2] : memref<16x32xf32, #tpu.memory_space<vmem>>, vector<16x32xf32>
    %4 = arith.addf %2, %3 : vector<16x32xf32>
    %c0_3 = arith.constant 0 : index
    %c0_4 = arith.constant 0 : index
    %5 = vector.load %arg5[%c0_3, %c0_4] : memref<1x32xf32, #tpu.memory_space<vmem>>, vector<1x32xf32>
    %c0_5 = arith.constant 0 : index
    %c0_6 = arith.constant 0 : index
    %6 = vector.load %arg6[%c0_5, %c0_6] : memref<1x32xf32, #tpu.memory_space<vmem>>, vector<1x32xf32>
    %cst_7 = arith.constant dense<0.000000e+00> : vector<16xf32>
    %7 = vector.multi_reduction <add>, %4, %cst_7 [1] : vector<16x32xf32> to vector<16xf32>
    %8 = vector.shape_cast %7 : vector<16xf32> to vector<16x1xf32>
    %cst_8 = arith.constant 3.200000e+01 : f32
    %9 = vector.broadcast %cst_8 : f32 to vector<16x1xf32>
    %10 = arith.divf %8, %9 : vector<16x1xf32>
    %11 = vector.broadcast %10 : vector<16x1xf32> to vector<16x32xf32>
    %12 = arith.subf %4, %11 : vector<16x32xf32>
    %13 = arith.mulf %12, %12 : vector<16x32xf32>
    %cst_9 = arith.constant dense<0.000000e+00> : vector<16xf32>
    %14 = vector.multi_reduction <add>, %13, %cst_9 [1] : vector<16x32xf32> to vector<16xf32>
    %15 = vector.shape_cast %14 : vector<16xf32> to vector<16x1xf32>
    %cst_10 = arith.constant 3.200000e+01 : f32
    %16 = vector.broadcast %cst_10 : f32 to vector<16x1xf32>
    %17 = arith.divf %15, %16 : vector<16x1xf32>
    %18 = vector.broadcast %10 : vector<16x1xf32> to vector<16x32xf32>
    %19 = arith.subf %4, %18 : vector<16x32xf32>
    %cst_11 = arith.constant 9.99999974E-6 : f32
    %20 = vector.broadcast %cst_11 : f32 to vector<16x1xf32>
    %21 = arith.addf %17, %20 : vector<16x1xf32>
    %22 = math.rsqrt %21 : vector<16x1xf32>
    %23 = vector.broadcast %22 : vector<16x1xf32> to vector<16x32xf32>
    %24 = arith.mulf %19, %23 : vector<16x32xf32>
    %25 = vector.broadcast %5 : vector<1x32xf32> to vector<16x32xf32>
    %26 = arith.mulf %24, %25 : vector<16x32xf32>
    %27 = vector.broadcast %6 : vector<1x32xf32> to vector<16x32xf32>
    %28 = arith.addf %26, %27 : vector<16x32xf32>
    %c0_12 = arith.constant 0 : index
    %c0_13 = arith.constant 0 : index
    %29 = vector.load %arg7[%c0_12, %c0_13] : memref<32x96xf32, #tpu.memory_space<vmem>>, vector<32x96xf32>
    %cst_14 = arith.constant dense<0.000000e+00> : vector<16x96xf32>
    %30 = tpu.matmul %28, %29, %cst_14 {dimension_numbers = #tpu.dot_dimension_numbers<[1], [0], [0], [1], [0, 0, 1, 1], [], []>} : vector<16x32xf32>, vector<32x96xf32>, vector<16x96xf32> -> vector<16x96xf32>
    %c0_15 = arith.constant 0 : index
    %c0_16 = arith.constant 0 : index
    %31 = vector.load %arg8[%c0_15, %c0_16] : memref<1x96xf32, #tpu.memory_space<vmem>>, vector<1x96xf32>
    %32 = vector.broadcast %31 : vector<1x96xf32> to vector<16x96xf32>
    %33 = arith.addf %30, %32 : vector<16x96xf32>
    %34 = vector.extract_strided_slice %33 {offsets = [0, 0], sizes = [16, 32], strides = [1, 1]} : vector<16x96xf32> to vector<16x32xf32>
    %35 = vector.extract_strided_slice %33 {offsets = [0, 32], sizes = [16, 32], strides = [1, 1]} : vector<16x96xf32> to vector<16x32xf32>
    %36 = vector.extract_strided_slice %33 {offsets = [0, 64], sizes = [16, 32], strides = [1, 1]} : vector<16x96xf32> to vector<16x32xf32>
    %c0_17 = arith.constant 0 : index
    %c0_18 = arith.constant 0 : index
    %37 = vector.load %arg9[%c0_17, %c0_18] : memref<32x32xf32, #tpu.memory_space<vmem>>, vector<32x32xf32>
    %c0_19 = arith.constant 0 : index
    %c0_20 = arith.constant 0 : index
    %38 = vector.load %arg3[%c0_19, %c0_20] : memref<16x16xf32, #tpu.memory_space<vmem>>, vector<16x16xf32>
    %cst_21 = arith.constant 0.000000e+00 : f32
    %39 = vector.broadcast %cst_21 : f32 to vector<16x32xf32>
    %40 = vector.extract_strided_slice %34 {offsets = [0, 0], sizes = [16, 8], strides = [1, 1]} : vector<16x32xf32> to vector<16x8xf32>
    %41 = vector.extract_strided_slice %35 {offsets = [0, 0], sizes = [16, 8], strides = [1, 1]} : vector<16x32xf32> to vector<16x8xf32>
    %42 = vector.extract_strided_slice %36 {offsets = [0, 0], sizes = [16, 8], strides = [1, 1]} : vector<16x32xf32> to vector<16x8xf32>
    %cst_22 = arith.constant dense<0.000000e+00> : vector<16x16xf32>
    %43 = tpu.matmul %40, %41, %cst_22 {dimension_numbers = #tpu.dot_dimension_numbers<[1], [1], [0], [0], [0, 0, 1, 0], [], []>} : vector<16x8xf32>, vector<16x8xf32>, vector<16x16xf32> -> vector<16x16xf32>
    %44 = arith.addf %43, %38 : vector<16x16xf32>
    %cst_23 = arith.constant dense<0xFF800000> : vector<16xf32>
    %45 = vector.multi_reduction <maximumf>, %44, %cst_23 [1] : vector<16x16xf32> to vector<16xf32>
    %46 = vector.shape_cast %45 : vector<16xf32> to vector<16x1xf32>
    %47 = vector.broadcast %46 : vector<16x1xf32> to vector<16x16xf32>
    %48 = arith.subf %44, %47 : vector<16x16xf32>
    %49 = math.exp %48 : vector<16x16xf32>
    %cst_24 = arith.constant dense<0.000000e+00> : vector<16xf32>
    %50 = vector.multi_reduction <add>, %49, %cst_24 [1] : vector<16x16xf32> to vector<16xf32>
    %51 = vector.shape_cast %50 : vector<16xf32> to vector<16x1xf32>
    %52 = vector.broadcast %51 : vector<16x1xf32> to vector<16x16xf32>
    %53 = arith.divf %49, %52 : vector<16x16xf32>
    %cst_25 = arith.constant dense<0.000000e+00> : vector<16x8xf32>
    %54 = tpu.matmul %53, %42, %cst_25 {dimension_numbers = #tpu.dot_dimension_numbers<[1], [0], [0], [1], [0, 0, 1, 1], [], []>} : vector<16x16xf32>, vector<16x8xf32>, vector<16x8xf32> -> vector<16x8xf32>
    %55 = vector.extract_strided_slice %37 {offsets = [0, 0], sizes = [8, 32], strides = [1, 1]} : vector<32x32xf32> to vector<8x32xf32>
    %cst_26 = arith.constant dense<0.000000e+00> : vector<16x32xf32>
    %56 = tpu.matmul %54, %55, %cst_26 {dimension_numbers = #tpu.dot_dimension_numbers<[1], [0], [0], [1], [0, 0, 1, 1], [], []>} : vector<16x8xf32>, vector<8x32xf32>, vector<16x32xf32> -> vector<16x32xf32>
    %57 = arith.addf %39, %56 : vector<16x32xf32>
    %58 = vector.extract_strided_slice %34 {offsets = [0, 8], sizes = [16, 8], strides = [1, 1]} : vector<16x32xf32> to vector<16x8xf32>
    %59 = vector.extract_strided_slice %35 {offsets = [0, 8], sizes = [16, 8], strides = [1, 1]} : vector<16x32xf32> to vector<16x8xf32>
    %60 = vector.extract_strided_slice %36 {offsets = [0, 8], sizes = [16, 8], strides = [1, 1]} : vector<16x32xf32> to vector<16x8xf32>
    %cst_27 = arith.constant dense<0.000000e+00> : vector<16x16xf32>
    %61 = tpu.matmul %58, %59, %cst_27 {dimension_numbers = #tpu.dot_dimension_numbers<[1], [1], [0], [0], [0, 0, 1, 0], [], []>} : vector<16x8xf32>, vector<16x8xf32>, vector<16x16xf32> -> vector<16x16xf32>
    %62 = arith.addf %61, %38 : vector<16x16xf32>
    %cst_28 = arith.constant dense<0xFF800000> : vector<16xf32>
    %63 = vector.multi_reduction <maximumf>, %62, %cst_28 [1] : vector<16x16xf32> to vector<16xf32>
    %64 = vector.shape_cast %63 : vector<16xf32> to vector<16x1xf32>
    %65 = vector.broadcast %64 : vector<16x1xf32> to vector<16x16xf32>
    %66 = arith.subf %62, %65 : vector<16x16xf32>
    %67 = math.exp %66 : vector<16x16xf32>
    %cst_29 = arith.constant dense<0.000000e+00> : vector<16xf32>
    %68 = vector.multi_reduction <add>, %67, %cst_29 [1] : vector<16x16xf32> to vector<16xf32>
    %69 = vector.shape_cast %68 : vector<16xf32> to vector<16x1xf32>
    %70 = vector.broadcast %69 : vector<16x1xf32> to vector<16x16xf32>
    %71 = arith.divf %67, %70 : vector<16x16xf32>
    %cst_30 = arith.constant dense<0.000000e+00> : vector<16x8xf32>
    %72 = tpu.matmul %71, %60, %cst_30 {dimension_numbers = #tpu.dot_dimension_numbers<[1], [0], [0], [1], [0, 0, 1, 1], [], []>} : vector<16x16xf32>, vector<16x8xf32>, vector<16x8xf32> -> vector<16x8xf32>
    %73 = vector.extract_strided_slice %37 {offsets = [8, 0], sizes = [8, 32], strides = [1, 1]} : vector<32x32xf32> to vector<8x32xf32>
    %cst_31 = arith.constant dense<0.000000e+00> : vector<16x32xf32>
    %74 = tpu.matmul %72, %73, %cst_31 {dimension_numbers = #tpu.dot_dimension_numbers<[1], [0], [0], [1], [0, 0, 1, 1], [], []>} : vector<16x8xf32>, vector<8x32xf32>, vector<16x32xf32> -> vector<16x32xf32>
    %75 = arith.addf %57, %74 : vector<16x32xf32>
    %76 = vector.extract_strided_slice %34 {offsets = [0, 16], sizes = [16, 8], strides = [1, 1]} : vector<16x32xf32> to vector<16x8xf32>
    %77 = vector.extract_strided_slice %35 {offsets = [0, 16], sizes = [16, 8], strides = [1, 1]} : vector<16x32xf32> to vector<16x8xf32>
    %78 = vector.extract_strided_slice %36 {offsets = [0, 16], sizes = [16, 8], strides = [1, 1]} : vector<16x32xf32> to vector<16x8xf32>
    %cst_32 = arith.constant dense<0.000000e+00> : vector<16x16xf32>
    %79 = tpu.matmul %76, %77, %cst_32 {dimension_numbers = #tpu.dot_dimension_numbers<[1], [1], [0], [0], [0, 0, 1, 0], [], []>} : vector<16x8xf32>, vector<16x8xf32>, vector<16x16xf32> -> vector<16x16xf32>
    %80 = arith.addf %79, %38 : vector<16x16xf32>
    %cst_33 = arith.constant dense<0xFF800000> : vector<16xf32>
    %81 = vector.multi_reduction <maximumf>, %80, %cst_33 [1] : vector<16x16xf32> to vector<16xf32>
    %82 = vector.shape_cast %81 : vector<16xf32> to vector<16x1xf32>
    %83 = vector.broadcast %82 : vector<16x1xf32> to vector<16x16xf32>
    %84 = arith.subf %80, %83 : vector<16x16xf32>
    %85 = math.exp %84 : vector<16x16xf32>
    %cst_34 = arith.constant dense<0.000000e+00> : vector<16xf32>
    %86 = vector.multi_reduction <add>, %85, %cst_34 [1] : vector<16x16xf32> to vector<16xf32>
    %87 = vector.shape_cast %86 : vector<16xf32> to vector<16x1xf32>
    %88 = vector.broadcast %87 : vector<16x1xf32> to vector<16x16xf32>
    %89 = arith.divf %85, %88 : vector<16x16xf32>
    %cst_35 = arith.constant dense<0.000000e+00> : vector<16x8xf32>
    %90 = tpu.matmul %89, %78, %cst_35 {dimension_numbers = #tpu.dot_dimension_numbers<[1], [0], [0], [1], [0, 0, 1, 1], [], []>} : vector<16x16xf32>, vector<16x8xf32>, vector<16x8xf32> -> vector<16x8xf32>
    %91 = vector.extract_strided_slice %37 {offsets = [16, 0], sizes = [8, 32], strides = [1, 1]} : vector<32x32xf32> to vector<8x32xf32>
    %cst_36 = arith.constant dense<0.000000e+00> : vector<16x32xf32>
    %92 = tpu.matmul %90, %91, %cst_36 {dimension_numbers = #tpu.dot_dimension_numbers<[1], [0], [0], [1], [0, 0, 1, 1], [], []>} : vector<16x8xf32>, vector<8x32xf32>, vector<16x32xf32> -> vector<16x32xf32>
    %93 = arith.addf %75, %92 : vector<16x32xf32>
    %94 = vector.extract_strided_slice %34 {offsets = [0, 24], sizes = [16, 8], strides = [1, 1]} : vector<16x32xf32> to vector<16x8xf32>
    %95 = vector.extract_strided_slice %35 {offsets = [0, 24], sizes = [16, 8], strides = [1, 1]} : vector<16x32xf32> to vector<16x8xf32>
    %96 = vector.extract_strided_slice %36 {offsets = [0, 24], sizes = [16, 8], strides = [1, 1]} : vector<16x32xf32> to vector<16x8xf32>
    %cst_37 = arith.constant dense<0.000000e+00> : vector<16x16xf32>
    %97 = tpu.matmul %94, %95, %cst_37 {dimension_numbers = #tpu.dot_dimension_numbers<[1], [1], [0], [0], [0, 0, 1, 0], [], []>} : vector<16x8xf32>, vector<16x8xf32>, vector<16x16xf32> -> vector<16x16xf32>
    %98 = arith.addf %97, %38 : vector<16x16xf32>
    %cst_38 = arith.constant dense<0xFF800000> : vector<16xf32>
    %99 = vector.multi_reduction <maximumf>, %98, %cst_38 [1] : vector<16x16xf32> to vector<16xf32>
    %100 = vector.shape_cast %99 : vector<16xf32> to vector<16x1xf32>
    %101 = vector.broadcast %100 : vector<16x1xf32> to vector<16x16xf32>
    %102 = arith.subf %98, %101 : vector<16x16xf32>
    %103 = math.exp %102 : vector<16x16xf32>
    %cst_39 = arith.constant dense<0.000000e+00> : vector<16xf32>
    %104 = vector.multi_reduction <add>, %103, %cst_39 [1] : vector<16x16xf32> to vector<16xf32>
    %105 = vector.shape_cast %104 : vector<16xf32> to vector<16x1xf32>
    %106 = vector.broadcast %105 : vector<16x1xf32> to vector<16x16xf32>
    %107 = arith.divf %103, %106 : vector<16x16xf32>
    %cst_40 = arith.constant dense<0.000000e+00> : vector<16x8xf32>
    %108 = tpu.matmul %107, %96, %cst_40 {dimension_numbers = #tpu.dot_dimension_numbers<[1], [0], [0], [1], [0, 0, 1, 1], [], []>} : vector<16x16xf32>, vector<16x8xf32>, vector<16x8xf32> -> vector<16x8xf32>
    %109 = vector.extract_strided_slice %37 {offsets = [24, 0], sizes = [8, 32], strides = [1, 1]} : vector<32x32xf32> to vector<8x32xf32>
    %cst_41 = arith.constant dense<0.000000e+00> : vector<16x32xf32>
    %110 = tpu.matmul %108, %109, %cst_41 {dimension_numbers = #tpu.dot_dimension_numbers<[1], [0], [0], [1], [0, 0, 1, 1], [], []>} : vector<16x8xf32>, vector<8x32xf32>, vector<16x32xf32> -> vector<16x32xf32>
    %111 = arith.addf %93, %110 : vector<16x32xf32>
    %c0_42 = arith.constant 0 : index
    %c0_43 = arith.constant 0 : index
    %112 = vector.load %arg10[%c0_42, %c0_43] : memref<1x32xf32, #tpu.memory_space<vmem>>, vector<1x32xf32>
    %113 = vector.broadcast %112 : vector<1x32xf32> to vector<16x32xf32>
    %114 = arith.addf %111, %113 : vector<16x32xf32>
    %115 = arith.addf %0, %114 : vector<16x32xf32>
    %c0_44 = arith.constant 0 : index
    %c0_45 = arith.constant 0 : index
    %116 = vector.load %arg11[%c0_44, %c0_45] : memref<1x32xf32, #tpu.memory_space<vmem>>, vector<1x32xf32>
    %c0_46 = arith.constant 0 : index
    %c0_47 = arith.constant 0 : index
    %117 = vector.load %arg12[%c0_46, %c0_47] : memref<1x32xf32, #tpu.memory_space<vmem>>, vector<1x32xf32>
    %cst_48 = arith.constant dense<0.000000e+00> : vector<16xf32>
    %118 = vector.multi_reduction <add>, %115, %cst_48 [1] : vector<16x32xf32> to vector<16xf32>
    %119 = vector.shape_cast %118 : vector<16xf32> to vector<16x1xf32>
    %cst_49 = arith.constant 3.200000e+01 : f32
    %120 = vector.broadcast %cst_49 : f32 to vector<16x1xf32>
    %121 = arith.divf %119, %120 : vector<16x1xf32>
    %122 = vector.broadcast %121 : vector<16x1xf32> to vector<16x32xf32>
    %123 = arith.subf %115, %122 : vector<16x32xf32>
    %124 = arith.mulf %123, %123 : vector<16x32xf32>
    %cst_50 = arith.constant dense<0.000000e+00> : vector<16xf32>
    %125 = vector.multi_reduction <add>, %124, %cst_50 [1] : vector<16x32xf32> to vector<16xf32>
    %126 = vector.shape_cast %125 : vector<16xf32> to vector<16x1xf32>
    %cst_51 = arith.constant 3.200000e+01 : f32
    %127 = vector.broadcast %cst_51 : f32 to vector<16x1xf32>
    %128 = arith.divf %126, %127 : vector<16x1xf32>
    %129 = vector.broadcast %121 : vector<16x1xf32> to vector<16x32xf32>
    %130 = arith.subf %115, %129 : vector<16x32xf32>
    %cst_52 = arith.constant 9.99999974E-6 : f32
    %131 = vector.broadcast %cst_52 : f32 to vector<16x1xf32>
    %132 = arith.addf %128, %131 : vector<16x1xf32>
    %133 = math.rsqrt %132 : vector<16x1xf32>
    %134 = vector.broadcast %133 : vector<16x1xf32> to vector<16x32xf32>
    %135 = arith.mulf %130, %134 : vector<16x32xf32>
    %136 = vector.broadcast %116 : vector<1x32xf32> to vector<16x32xf32>
    %137 = arith.mulf %135, %136 : vector<16x32xf32>
    %138 = vector.broadcast %117 : vector<1x32xf32> to vector<16x32xf32>
    %139 = arith.addf %137, %138 : vector<16x32xf32>
    %c0_53 = arith.constant 0 : index
    %c0_54 = arith.constant 0 : index
    %140 = vector.load %arg13[%c0_53, %c0_54] : memref<32x128xf32, #tpu.memory_space<vmem>>, vector<32x128xf32>
    %cst_55 = arith.constant dense<0.000000e+00> : vector<16x128xf32>
    %141 = tpu.matmul %139, %140, %cst_55 {dimension_numbers = #tpu.dot_dimension_numbers<[1], [0], [0], [1], [0, 0, 1, 1], [], []>} : vector<16x32xf32>, vector<32x128xf32>, vector<16x128xf32> -> vector<16x128xf32>
    %c0_56 = arith.constant 0 : index
    %c0_57 = arith.constant 0 : index
    %142 = vector.load %arg14[%c0_56, %c0_57] : memref<1x128xf32, #tpu.memory_space<vmem>>, vector<1x128xf32>
    %143 = vector.broadcast %142 : vector<1x128xf32> to vector<16x128xf32>
    %144 = arith.addf %141, %143 : vector<16x128xf32>
    %cst_58 = arith.constant 5.000000e-01 : f32
    %145 = vector.broadcast %cst_58 : f32 to vector<16x128xf32>
    %146 = arith.mulf %145, %144 : vector<16x128xf32>
    %cst_59 = arith.constant 0.707106769 : f32
    %147 = vector.broadcast %cst_59 : f32 to vector<16x128xf32>
    %148 = arith.mulf %144, %147 : vector<16x128xf32>
    %149 = math.absf %148 : vector<16x128xf32>
    %cst_60 = arith.constant 0.327591091 : f32
    %150 = vector.broadcast %cst_60 : f32 to vector<16x128xf32>
    %151 = arith.mulf %150, %149 : vector<16x128xf32>
    %cst_61 = arith.constant 1.000000e+00 : f32
    %152 = vector.broadcast %cst_61 : f32 to vector<16x128xf32>
    %153 = arith.addf %152, %151 : vector<16x128xf32>
    %cst_62 = arith.constant 1.000000e+00 : f32
    %154 = vector.broadcast %cst_62 : f32 to vector<16x128xf32>
    %155 = arith.divf %154, %153 : vector<16x128xf32>
    %cst_63 = arith.constant 1.06140542 : f32
    %156 = vector.broadcast %cst_63 : f32 to vector<16x128xf32>
    %157 = arith.mulf %156, %155 : vector<16x128xf32>
    %cst_64 = arith.constant -1.45315206 : f32
    %158 = vector.broadcast %cst_64 : f32 to vector<16x128xf32>
    %159 = arith.addf %157, %158 : vector<16x128xf32>
    %160 = arith.mulf %159, %155 : vector<16x128xf32>
    %cst_65 = arith.constant 1.42141378 : f32
    %161 = vector.broadcast %cst_65 : f32 to vector<16x128xf32>
    %162 = arith.addf %160, %161 : vector<16x128xf32>
    %163 = arith.mulf %162, %155 : vector<16x128xf32>
    %cst_66 = arith.constant -0.284496725 : f32
    %164 = vector.broadcast %cst_66 : f32 to vector<16x128xf32>
    %165 = arith.addf %163, %164 : vector<16x128xf32>
    %166 = arith.mulf %165, %155 : vector<16x128xf32>
    %cst_67 = arith.constant 0.254829586 : f32
    %167 = vector.broadcast %cst_67 : f32 to vector<16x128xf32>
    %168 = arith.addf %166, %167 : vector<16x128xf32>
    %169 = arith.mulf %168, %155 : vector<16x128xf32>
    %cst_68 = arith.constant 0.000000e+00 : f32
    %170 = vector.broadcast %cst_68 : f32 to vector<16x128xf32>
    %171 = arith.subf %170, %149 : vector<16x128xf32>
    %172 = arith.mulf %171, %149 : vector<16x128xf32>
    %173 = math.exp %172 : vector<16x128xf32>
    %174 = arith.mulf %169, %173 : vector<16x128xf32>
    %cst_69 = arith.constant 1.000000e+00 : f32
    %175 = vector.broadcast %cst_69 : f32 to vector<16x128xf32>
    %176 = arith.subf %175, %174 : vector<16x128xf32>
    %cst_70 = arith.constant 0.000000e+00 : f32
    %177 = vector.broadcast %cst_70 : f32 to vector<16x128xf32>
    %178 = arith.cmpf oge, %148, %177 : vector<16x128xf32>
    %cst_71 = arith.constant 0.000000e+00 : f32
    %179 = vector.broadcast %cst_71 : f32 to vector<16x128xf32>
    %180 = arith.subf %179, %176 : vector<16x128xf32>
    %181 = arith.select %178, %176, %180 : vector<16x128xi1>, vector<16x128xf32>
    %cst_72 = arith.constant 1.000000e+00 : f32
    %182 = vector.broadcast %cst_72 : f32 to vector<16x128xf32>
    %183 = arith.addf %182, %181 : vector<16x128xf32>
    %184 = arith.mulf %146, %183 : vector<16x128xf32>
    %c0_73 = arith.constant 0 : index
    %c0_74 = arith.constant 0 : index
    %185 = vector.load %arg4[%c0_73, %c0_74] : memref<16x16xf32, #tpu.memory_space<vmem>>, vector<16x16xf32>
    %cst_75 = arith.constant dense<0.000000e+00> : vector<16x128xf32>
    %186 = tpu.matmul %185, %184, %cst_75 {dimension_numbers = #tpu.dot_dimension_numbers<[1], [0], [0], [1], [0, 0, 1, 1], [], []>} : vector<16x16xf32>, vector<16x128xf32>, vector<16x128xf32> -> vector<16x128xf32>
    %187 = tpu.iota {dimensions = array<i32: 1>} : vector<16x128xi32>
    %c0_i32 = arith.constant 0 : i32
    %188 = vector.broadcast %c0_i32 : i32 to vector<16x128xi32>
    %189 = arith.cmpi eq, %187, %188 : vector<16x128xi32>
    %190 = arith.select %189, %186, %184 : vector<16x128xi1>, vector<16x128xf32>
    %cst_76 = arith.constant 5.000000e-01 : f32
    %191 = vector.broadcast %cst_76 : f32 to vector<16x128xf32>
    %192 = arith.mulf %191, %190 : vector<16x128xf32>
    %cst_77 = arith.constant 0.707106769 : f32
    %193 = vector.broadcast %cst_77 : f32 to vector<16x128xf32>
    %194 = arith.mulf %190, %193 : vector<16x128xf32>
    %195 = math.absf %194 : vector<16x128xf32>
    %cst_78 = arith.constant 0.327591091 : f32
    %196 = vector.broadcast %cst_78 : f32 to vector<16x128xf32>
    %197 = arith.mulf %196, %195 : vector<16x128xf32>
    %cst_79 = arith.constant 1.000000e+00 : f32
    %198 = vector.broadcast %cst_79 : f32 to vector<16x128xf32>
    %199 = arith.addf %198, %197 : vector<16x128xf32>
    %cst_80 = arith.constant 1.000000e+00 : f32
    %200 = vector.broadcast %cst_80 : f32 to vector<16x128xf32>
    %201 = arith.divf %200, %199 : vector<16x128xf32>
    %cst_81 = arith.constant 1.06140542 : f32
    %202 = vector.broadcast %cst_81 : f32 to vector<16x128xf32>
    %203 = arith.mulf %202, %201 : vector<16x128xf32>
    %cst_82 = arith.constant -1.45315206 : f32
    %204 = vector.broadcast %cst_82 : f32 to vector<16x128xf32>
    %205 = arith.addf %203, %204 : vector<16x128xf32>
    %206 = arith.mulf %205, %201 : vector<16x128xf32>
    %cst_83 = arith.constant 1.42141378 : f32
    %207 = vector.broadcast %cst_83 : f32 to vector<16x128xf32>
    %208 = arith.addf %206, %207 : vector<16x128xf32>
    %209 = arith.mulf %208, %201 : vector<16x128xf32>
    %cst_84 = arith.constant -0.284496725 : f32
    %210 = vector.broadcast %cst_84 : f32 to vector<16x128xf32>
    %211 = arith.addf %209, %210 : vector<16x128xf32>
    %212 = arith.mulf %211, %201 : vector<16x128xf32>
    %cst_85 = arith.constant 0.254829586 : f32
    %213 = vector.broadcast %cst_85 : f32 to vector<16x128xf32>
    %214 = arith.addf %212, %213 : vector<16x128xf32>
    %215 = arith.mulf %214, %201 : vector<16x128xf32>
    %cst_86 = arith.constant 0.000000e+00 : f32
    %216 = vector.broadcast %cst_86 : f32 to vector<16x128xf32>
    %217 = arith.subf %216, %195 : vector<16x128xf32>
    %218 = arith.mulf %217, %195 : vector<16x128xf32>
    %219 = math.exp %218 : vector<16x128xf32>
    %220 = arith.mulf %215, %219 : vector<16x128xf32>
    %cst_87 = arith.constant 1.000000e+00 : f32
    %221 = vector.broadcast %cst_87 : f32 to vector<16x128xf32>
    %222 = arith.subf %221, %220 : vector<16x128xf32>
    %cst_88 = arith.constant 0.000000e+00 : f32
    %223 = vector.broadcast %cst_88 : f32 to vector<16x128xf32>
    %224 = arith.cmpf oge, %194, %223 : vector<16x128xf32>
    %cst_89 = arith.constant 0.000000e+00 : f32
    %225 = vector.broadcast %cst_89 : f32 to vector<16x128xf32>
    %226 = arith.subf %225, %222 : vector<16x128xf32>
    %227 = arith.select %224, %222, %226 : vector<16x128xi1>, vector<16x128xf32>
    %cst_90 = arith.constant 1.000000e+00 : f32
    %228 = vector.broadcast %cst_90 : f32 to vector<16x128xf32>
    %229 = arith.addf %228, %227 : vector<16x128xf32>
    %230 = arith.mulf %192, %229 : vector<16x128xf32>
    %c0_91 = arith.constant 0 : index
    %c0_92 = arith.constant 0 : index
    %231 = vector.load %arg15[%c0_91, %c0_92] : memref<128x32xf32, #tpu.memory_space<vmem>>, vector<128x32xf32>
    %cst_93 = arith.constant dense<0.000000e+00> : vector<16x32xf32>
    %232 = tpu.matmul %230, %231, %cst_93 {dimension_numbers = #tpu.dot_dimension_numbers<[1], [0], [0], [1], [0, 0, 1, 1], [], []>} : vector<16x128xf32>, vector<128x32xf32>, vector<16x32xf32> -> vector<16x32xf32>
    %c0_94 = arith.constant 0 : index
    %c0_95 = arith.constant 0 : index
    %233 = vector.load %arg16[%c0_94, %c0_95] : memref<1x32xf32, #tpu.memory_space<vmem>>, vector<1x32xf32>
    %234 = vector.broadcast %233 : vector<1x32xf32> to vector<16x32xf32>
    %235 = arith.addf %232, %234 : vector<16x32xf32>
    %236 = arith.addf %115, %235 : vector<16x32xf32>
    %c0_96 = arith.constant 0 : index
    %c0_97 = arith.constant 0 : index
    %237 = vector.load %arg17[%c0_96, %c0_97] : memref<16x32xf32, #tpu.memory_space<vmem>>, vector<16x32xf32>
    tpu.vector_store %arg17[%c0_96, %c0_97], %236 {strides = array<i32>} : memref<16x32xf32, #tpu.memory_space<vmem>>, vector<16x32xf32>,
    return
  }
  func.func @transform_0(%arg0: i32) -> (i32, i32) {
    %c0_i32 = arith.constant 0 : i32
    %c0_i32_0 = arith.constant 0 : i32
    return %arg0, %c0_i32 : i32, i32
  }
  func.func @transform_1(%arg0: i32) -> (i32, i32) {
    %c0_i32 = arith.constant 0 : i32
    %c0_i32_0 = arith.constant 0 : i32
    %c0_i32_1 = arith.constant 0 : i32
    return %c0_i32, %c0_i32_0 : i32, i32
  }
  func.func @transform_2(%arg0: i32) -> (i32, i32) {
    %c0_i32 = arith.constant 0 : i32
    %c0_i32_0 = arith.constant 0 : i32
    %c0_i32_1 = arith.constant 0 : i32
    return %c0_i32, %c0_i32_0 : i32, i32
  }
  func.func @transform_3(%arg0: i32) -> (i32, i32) {
    %c0_i32 = arith.constant 0 : i32
    %c0_i32_0 = arith.constant 0 : i32
    %c0_i32_1 = arith.constant 0 : i32
    return %c0_i32, %c0_i32_0 : i32, i32
  }
  func.func @transform_4(%arg0: i32) -> (i32, i32) {
    %c0_i32 = arith.constant 0 : i32
    %c0_i32_0 = arith.constant 0 : i32
    %c0_i32_1 = arith.constant 0 : i32
    return %c0_i32, %c0_i32_0 : i32, i32
  }
  func.func @transform_5(%arg0: i32) -> (i32, i32) {
    %c0_i32 = arith.constant 0 : i32
    %c0_i32_0 = arith.constant 0 : i32
    %c0_i32_1 = arith.constant 0 : i32
    return %c0_i32, %c0_i32_0 : i32, i32
  }
  func.func @transform_6(%arg0: i32) -> (i32, i32) {
    %c0_i32 = arith.constant 0 : i32
    %c0_i32_0 = arith.constant 0 : i32
    %c0_i32_1 = arith.constant 0 : i32
    return %c0_i32, %c0_i32_0 : i32, i32
  }
  func.func @transform_7(%arg0: i32) -> (i32, i32) {
    %c0_i32 = arith.constant 0 : i32
    %c0_i32_0 = arith.constant 0 : i32
    %c0_i32_1 = arith.constant 0 : i32
    return %c0_i32, %c0_i32_0 : i32, i32
  }
  func.func @transform_8(%arg0: i32) -> (i32, i32) {
    %c0_i32 = arith.constant 0 : i32
    %c0_i32_0 = arith.constant 0 : i32
    %c0_i32_1 = arith.constant 0 : i32
    return %c0_i32, %c0_i32_0 : i32, i32
  }
  func.func @transform_9(%arg0: i32) -> (i32, i32) {
    %c0_i32 = arith.constant 0 : i32
    %c0_i32_0 = arith.constant 0 : i32
    %c0_i32_1 = arith.constant 0 : i32
    return %c0_i32, %c0_i32_0 : i32, i32
  }
  func.func @transform_10(%arg0: i32) -> (i32, i32) {
    %c0_i32 = arith.constant 0 : i32
    %c0_i32_0 = arith.constant 0 : i32
    %c0_i32_1 = arith.constant 0 : i32
    return %c0_i32, %c0_i32_0 : i32, i32
  }
  func.func @transform_11(%arg0: i32) -> (i32, i32) {
    %c0_i32 = arith.constant 0 : i32
    %c0_i32_0 = arith.constant 0 : i32
    %c0_i32_1 = arith.constant 0 : i32
    return %c0_i32, %c0_i32_0 : i32, i32
  }
  func.func @transform_12(%arg0: i32) -> (i32, i32) {
    %c0_i32 = arith.constant 0 : i32
    %c0_i32_0 = arith.constant 0 : i32
    %c0_i32_1 = arith.constant 0 : i32
    return %c0_i32, %c0_i32_0 : i32, i32
  }
  func.func @transform_13(%arg0: i32) -> (i32, i32) {
    %c0_i32 = arith.constant 0 : i32
    %c0_i32_0 = arith.constant 0 : i32
    %c0_i32_1 = arith.constant 0 : i32
    return %c0_i32, %c0_i32_0 : i32, i32
  }
  func.func @transform_14(%arg0: i32) -> (i32, i32) {
    %c0_i32 = arith.constant 0 : i32
    %c0_i32_0 = arith.constant 0 : i32
    %c0_i32_1 = arith.constant 0 : i32
    return %c0_i32, %c0_i32_0 : i32, i32
  }
  func.func @transform_15(%arg0: i32) -> (i32, i32) {
    %c0_i32 = arith.constant 0 : i32
    %c0_i32_0 = arith.constant 0 : i32
    %c0_i32_1 = arith.constant 0 : i32
    return %c0_i32, %c0_i32_0 : i32, i32
  }
  func.func @transform_16(%arg0: i32) -> (i32, i32) {
    %c0_i32 = arith.constant 0 : i32
    %c0_i32_0 = arith.constant 0 : i32
    return %arg0, %c0_i32 : i32, i32
  }
}

</mosaic_0001>

<bundles_post_ra>
// kernel: tpu_custom_call.1
= control target key start
LH: loop header
LB: loop body
LE: loop exit
PB: predicated region body
PF: predicated region fallthrough
CT: control target
= control target key end

     0   :  { %s1733_s0 = inlined_call_operand.vmem [shape: f32[16,32], index: 0, kind: input, shape index: {}]   ;;  %s1734_s1 = inlined_call_operand.vmem [shape: f32[16,32], index: 1, kind: input, shape index: {}]   ;;  %s1735_s2 = inlined_call_operand.vmem [shape: f32[16,16], index: 2, kind: input, shape index: {}]   ;;  %s1736_s3 = inlined_call_operand.vmem [shape: f32[16,16], index: 3, kind: input, shape index: {}]   ;;  %s1737_s4 = inlined_call_operand.vmem [shape: f32[1,32], index: 4, kind: input, shape index: {}]   ;;  %s1738_s5 = inlined_call_operand.vmem [shape: f32[1,32], index: 5, kind: input, shape index: {}]   ;;  %s1739_s6 = inlined_call_operand.vmem [shape: f32[32,96], index: 6, kind: input, shape index: {}]   ;;  %s1740_s7 = inlined_call_operand.vmem [shape: f32[1,96], index: 7, kind: input, shape index: {}]   ;;  %s1741_s8 = inlined_call_operand.vmem [shape: f32[32,32], index: 8, kind: input, shape index: {}]   ;;  %s1742_s9 = inlined_call_operand.vmem [shape: f32[1,32], index: 9, kind: input, shape index: {}]   ;;  %s1743_s10 = inlined_call_operand.vmem [shape: f32[1,32], index: 10, kind: input, shape index: {}]   ;;  %s1744_s11 = inlined_call_operand.vmem [shape: f32[1,32], index: 11, kind: input, shape index: {}]   ;;  %s1745_s12 = inlined_call_operand.vmem [shape: f32[32,128], index: 12, kind: input, shape index: {}]   ;;  %s1746_s13 = inlined_call_operand.vmem [shape: f32[1,128], index: 13, kind: input, shape index: {}]   ;;  %s1747_s14 = inlined_call_operand.vmem [shape: f32[128,32], index: 14, kind: input, shape index: {}]   ;;  %s1748_s15 = inlined_call_operand.vmem [shape: f32[1,32], index: 15, kind: input, shape index: {}]   ;;  %s1749_s16 = inlined_call_operand.hbm [shape: f32[16,32], index: 16, kind: output, shape index: {}]  }
   0x1   :  { %1751 = sst [smem:[#allocation5_spill]] %s1733_s0 }
   0x2   :  { %s1752_s23 = sld [smem:[#allocation5_spill]]  ;;  %v58_v1 = vld [vmem:[%s1734_s1] sm:$0xff]  ;;  %vm64_vm0 = vcmask 261120   ;;  %v59_v5 = vld [vmem:[%s1734_s1 + $0x8] sm:$0xff] }
   0x8   :  { %v1409_v0 = vld [vmem:[%s1752_s23] sm:$0xff]  ;;  %v1417_v2 = vld [vmem:[%s1752_s23 + $0x8] sm:$0xff] }
   0x9   :  { %v56_v3 = vmul.f32 5.656854, %v1409_v0  ;;  %v57_v4 = vmul.f32 5.656854, %v1417_v2 }
   0xb   :  { %v60_v6 = vadd.f32 %v58_v1, %v56_v3 }
   0xc   :  { %21 = vsyncpa [#allocation3], 0  ;;  %v61_v8 = vadd.f32 %v59_v5, %v57_v4  ;;  %v1306_v10 = vmov 32.0   ;;  %v129_v27 = vld [vmem:[%s1739_s6 + $0x18] sm:$0xff]  ;;  %v128_v28 = vld [vmem:[%s1739_s6 + $0x10] sm:$0xff]  ;;  %vm175_vm8 = vcmask 64512  }
   0xd   :  { %v65_v7 = vsel %vm64_vm0, %v60_v6, 0.0  ;;  %1222 = vrcp.f32 %v1306_v10  ;;  %152 = vmatpush.msra.mxu0 %v129_v27  ;;  %v127_v29 = vld [vmem:[%s1739_s6 + $0x8] sm:$0xff]  ;;  %v126_v30 = vld [vmem:[%s1739_s6] sm:$0xff]  ;;  %vm207_vm9 = vcmask 130048   ;;  %s1308_s29 = smov 64   ;;  %s1309_s1 = smov 88  }
   0xe   :  { %66 = vadd.xlane.f32.xlu0 %v65_v7  ;;  %v68_v9 = vsel %vm64_vm0, %v61_v8, 0.0  ;;  %v1214_v45 = vld [vmem:[%s1737_s4] ss:$0 sm:$0xff]  ;;  %s1310_s30 = smov 120   ;;  %s1311_s0 = smov 80  }
   0xf   :  { %153 = vmatpush.msra.mxu0 %v128_v28  ;;  %v1215_v49 = vld [vmem:[%s1738_s5] ss:$0 sm:$0xff]  ;;  %s1307_s5 = smov 96   ;;  %s1313_s17 = smov 104  }
  0x10   :  { %v1216_v60 = vld [vmem:[%s1740_s7] ss:$0 sm:$0xff]  ;;  %s1314_s18 = smov 72   ;;  %s1315_s21 = smov 48  }
  0x11   :  { %154 = vmatpush.msra.mxu0 %v127_v29  ;;  %v1464_v4 = vld [vmem:[%s1735_s2] sm:$0xff]  ;;  %s1316_s6 = smov 56   ;;  %s1317_s22 = smov 40  }
  0x12   :  { %v163_v28 = vld [vmem:[%s1741_s8] sm:$0xff]  ;;  %s1127_s7 = sshll.u32 %s1749_s16, 4  ;;  %s1128_s7 = int_to_ptr.hbm [resolvable:$true] %s1127_s7 }
  0x13   :  { %v1223_v11 = vpop.eup %1222  ;;  %155 = vmatpush.msra.mxu0 %v126_v30 }
  0x14   :  { %v72_v12 = vmul.f32 32.0, %v1223_v11  ;;  %vm76_vm1 = vweird.f32 %v1223_v11 }
  0x16   :  { %69 = vadd.xlane.f32.xlu0 %v68_v9  ;;  %v73_v13 = vsub.f32 1.0, %v72_v12 }
  0x18   :  { %v74_v14 = vmul.f32 %v1223_v11, %v73_v13 }
  0x1a   :  { %v75_v15 = vadd.f32 %v1223_v11, %v74_v14 }
  0x1c   :  { %v1426_v16 = vsel %vm76_vm1, %v1223_v11, %v75_v15 }
  0x81   :  { %v67_v17 = vpop.xlane.xlu0 %66 }
  0x82   :  { %v78_v18 = vmul.f32 %v1426_v16, %v67_v17 }
  0x84   :  { %v80_v19 = vsub.f32 %v60_v6, %v78_v18 }
  0x86   :  { %v82_v20 = vmul.f32 %v80_v19, %v80_v19 }
  0x88   :  { %v84_v21 = vsel %vm64_vm0, %v82_v20, 0.0 }
  0x89   :  { %85 = vadd.xlane.f32.xlu1 %v84_v21  ;;  %v70_v22 = vpop.xlane.xlu0 %69 }
  0x8a   :  { %v79_v23 = vmul.f32 %v1426_v16, %v70_v22 }
  0x8c   :  { %v81_v24 = vsub.f32 %v61_v8, %v79_v23  ;;  %v1471_v8 = vld [vmem:[%s1735_s2 + $0x8] sm:$0xff]  ;;  %s1312_s2 = smov 112  }
  0x8e   :  { %v83_v25 = vmul.f32 %v81_v24, %v81_v24 }
  0x90   :  { %v87_v26 = vsel %vm64_vm0, %v83_v25, 0.0 }
  0x91   :  { %88 = vadd.xlane.f32.xlu1 %v87_v26 }
  0xfc   :  { %v86_v31 = vpop.xlane.xlu1 %85 }
  0xfd   :  { %v90_v32 = vmul.f32 %v86_v31, %v1426_v16 }
  0xff   :  { %v92_v33 = vadd.f32 1e-05, %v90_v32 }
 0x101   :  { %1224 = vrsqrt.f32 %v92_v33  ;;  %vm100_vm3 = vweird.f32 %v92_v33 }
 0x104   :  { %v89_v34 = vpop.xlane.xlu1 %88 }
 0x105   :  { %v91_v35 = vmul.f32 %v89_v34, %v1426_v16 }
 0x107   :  { %v1225_v36 = vpop.eup %1224  ;;  %v93_v37 = vadd.f32 1e-05, %v91_v35 }
 0x108   :  { %v95_v38 = vmul.f32 %v1225_v36, %v92_v33  ;;  %vm101_vm2 = vweird.f32 %v1225_v36 }
 0x109   :  { %1226 = vrsqrt.f32 %v93_v37  ;;  %vm102_vm4 = vmor %vm100_vm3, %vm101_vm2  ;;  %vm110_vm6 = vweird.f32 %v93_v37 }
 0x10a   :  { %v96_v39 = vmul.f32 %v1225_v36, %v95_v38 }
 0x10c   :  { %v97_v40 = vmul.f32 0.5, %v96_v39 }
 0x10e   :  { %v98_v41 = vsub.f32 1.5, %v97_v40 }
 0x10f   :  { %v1227_v42 = vpop.eup %1226 }
 0x110   :  { %v99_v43 = vmul.f32 %v1225_v36, %v98_v41  ;;  %v105_v44 = vmul.f32 %v1227_v42, %v93_v37  ;;  %vm111_vm5 = vweird.f32 %v1227_v42 }
 0x111   :  { %vm112_vm7 = vmor %vm110_vm6, %vm111_vm5 }
 0x112   :  { %v103_v46 = vsel %vm102_vm4, %v1225_v36, %v99_v43  ;;  %v106_v47 = vmul.f32 %v1227_v42, %v105_v44 }
 0x113   :  { %v114_v48 = vmul.f32 %v103_v46, %v80_v19 }
 0x114   :  { %v107_v50 = vmul.f32 0.5, %v106_v47 }
 0x115   :  { %v119_v51 = vmul.f32 %v1214_v45, %v114_v48 }
 0x116   :  { %v108_v52 = vsub.f32 1.5, %v107_v50 }
 0x117   :  { %v124_v53 = vadd.f32 %v1215_v49, %v119_v51 }
 0x118   :  { %v109_v54 = vmul.f32 %v1227_v42, %v108_v52 }
 0x119   :  { %1139 = vmatmul.msk.f32.vlgmr.msra.gmra.mxu0 %vm64_vm0, %v124_v53 }
 0x11a   :  { %v113_v55 = vsel %vm112_vm7, %v1227_v42, %v109_v54 }
 0x11b   :  { %v115_v56 = vmul.f32 %v113_v55, %v81_v24 }
 0x11d   :  { %v120_v57 = vmul.f32 %v1214_v45, %v115_v56 }
 0x11f   :  { %v125_v58 = vadd.f32 %v1215_v49, %v120_v57 }
 0x121   :  { %1140 = vmatmul.msk.f32.gmra.mxu0 %vm64_vm0, %v125_v58 }
 0x196   :  { %v157_v59 = vpop.f32.mrf.mxu0 }
 0x197   :  { %v158_v63 = vadd.f32 %v1216_v60, %v157_v59 }
 0x19e   :  { %v160_v61 = vpop.f32.mrf.mxu0 }
 0x19f   :  { %v161_v62 = vadd.f32 %v1216_v60, %v160_v61 }
 0x1a1   :  { %173 = vrot.lane.b32.xlu2 %v161_v62, %s1307_s5  ;;  %v1475_v12 = vpack.i.bf16 %v158_v63, %v161_v62 }
 0x1a9   :  { %171 = vrot.lane.b32.xlu2 %v158_v63, %s1307_s5  ;;  %s1318_s5 = smov [#allocation2]  }
 0x1fb   :  { %v174_v1 = vpop.permute.xlu2 %173 }
 0x1fc   :  { %1141 = vmatpush.xpose.msk.msra.mxu1 %vm175_vm8, %v174_v1 }
 0x203   :  { %v172_v3 = vpop.permute.xlu2 %171 }
 0x204   :  { %1142 = vmatpush.xpose.msk.msra.mxu1 %vm175_vm8, %v172_v3 }
 0x207   :  { %1143 = vmatmul.msk.f32.vlgmr.msra.gmra.mxu1 %vm175_vm8, %v158_v63 }
 0x208   :  { %463 = vmatpush.msrb.mxu1 %v163_v28 }
 0x20f   :  { %1144 = vmatmul.msk.f32.gmra.mxu1 %vm175_vm8, %v161_v62 }
 0x284   :  { %v201_v5 = vpop.f32.mrf.mxu1 }
 0x285   :  { %v202_v6 = vadd.f32 %v201_v5, %v1464_v4 }
 0x287   :  { %v208_v7 = vsel %vm207_vm9, %v202_v6, -inf }
 0x288   :  { %209 = vmax.xlane.f32.xlu0 %v208_v7 }
 0x28c   :  { %v204_v9 = vpop.f32.mrf.mxu1 }
 0x28d   :  { %v205_v10 = vadd.f32 %v204_v9, %v1471_v8 }
 0x28f   :  { %v211_v11 = vsel %vm207_vm9, %v205_v10, -inf }
 0x290   :  { %212 = vmax.xlane.f32.xlu1 %v211_v11 }
 0x2a9   :  { %1195 = vrot.lane.b32.xlu1 %v1475_v12, %s1308_s29 }
 0x2b1   :  { %295 = vrot.lane.b32.xlu1 %v158_v63, %s1309_s1 }
 0x2b9   :  { %293 = vrot.lane.b32.xlu1 %v161_v62, %s1310_s30 }
 0x2c1   :  { %475 = vrot.lane.b32.xlu1 %v158_v63, %s1311_s0 }
 0x2c9   :  { %471 = vrot.lane.b32.xlu1 %v158_v63, %s1312_s2 }
 0x2d1   :  { %473 = vrot.lane.b32.xlu1 %v161_v62, %s1312_s2 }
 0x2fb   :  { %v210_v13 = vpop.xlane.xlu0 %209 }
 0x2fc   :  { %v214_v14 = vsub.f32 %v202_v6, %v210_v13 }
 0x2fe   :  { %v216_v15 = vmul.f32 1.442695, %v214_v14 }
 0x300   :  { %1228 = vpow2.f32 %v216_v15 }
 0x303   :  { %v213_v17 = vpop.xlane.xlu1 %212 }
 0x304   :  { %v215_v18 = vsub.f32 %v205_v10, %v213_v17 }
 0x306   :  { %v1229_v19 = vpop.eup %1228  ;;  %v218_v20 = vmul.f32 1.442695, %v215_v18 }
 0x307   :  { %v220_v21 = vsel %vm207_vm9, %v1229_v19, 0.0 }
 0x308   :  { %1230 = vpow2.f32 %v218_v20  ;;  %221 = vadd.xlane.f32.xlu2 %v220_v21 }
 0x30e   :  { %v1231_v22 = vpop.eup %1230 }
 0x30f   :  { %v223_v23 = vsel %vm207_vm9, %v1231_v22, 0.0 }
 0x310   :  { %224 = vadd.xlane.f32.xlu0 %v223_v23 }
 0x31b   :  { %v1196_v24 = vpop.permute.xlu1 %1195 }
 0x31c   :  { %v1197_v25 = vunpack.i.l.bf16 %v1196_v24  ;;  %v1198_v26 = vunpack.i.h.bf16 %v1196_v24 }
 0x31e   :  { %282 = vmatpush.msra.mxu2 %v1197_v25 }
 0x320   :  { %283 = vmatpush.msra.mxu2 %v1198_v26  ;;  %477 = vrot.lane.b32.xlu2 %v161_v62, %s1311_s0 }
 0x323   :  { %v296_v32 = vpop.permute.xlu1 %295 }
 0x324   :  { %297 = vrot.lane.b32.xlu0 %v161_v62, %s1309_s1 }
 0x328   :  { %626 = vrot.lane.b32.xlu2 %v161_v62, %s1313_s17 }
 0x32b   :  { %v294_v46 = vpop.permute.xlu1 %293 }
 0x32c   :  { %291 = vrot.lane.b32.xlu0 %v158_v63, %s1310_s30 }
 0x333   :  { %v476_v55 = vpop.permute.xlu1 %475 }
 0x334   :  { %630 = vrot.lane.b32.xlu0 %v161_v62, %s1314_s18 }
 0x33b   :  { %v472_v58 = vpop.permute.xlu1 %471 }
 0x33c   :  { %628 = vrot.lane.b32.xlu0 %v158_v63, %s1314_s18 }
 0x343   :  { %v474_v60 = vpop.permute.xlu1 %473 }
 0x344   :  { %624 = vrot.lane.b32.xlu0 %v158_v63, %s1313_s17 }
 0x37b   :  { %v222_v27 = vpop.xlane.xlu2 %221 }
 0x37c   :  { %1232 = vrcp.f32 %v222_v27  ;;  %v237_v34 = vand.u32 2147483648, %v222_v27  ;;  %v235_v36 = vand.u32 2147483647, %v222_v27  ;;  %vm231_vm11 = vweird.f32 %v222_v27 }
 0x37e   :  { %v238_v39 = vor.u32 1.1754944e-38, %v237_v34  ;;  %vm236_vm13 = vcmp.eq.f32.partialorder %v235_v36, 8.507059e+37 }
 0x382   :  { %v1233_v29 = vpop.eup %1232 }
 0x383   :  { %v227_v30 = vmul.f32 %v1233_v29, %v222_v27  ;;  %v225_v31 = vpop.xlane.xlu0 %224  ;;  %vm232_vm10 = vweird.f32 %v1233_v29  ;;  %v478_v56 = vpop.permute.xlu2 %477 }
 0x384   :  { %1234 = vrcp.f32 %v225_v31  ;;  %vm233_vm12 = vmor %vm231_vm11, %vm232_vm10  ;;  %v252_v45 = vand.u32 2147483648, %v225_v31  ;;  %v250_v48 = vand.u32 2147483647, %v225_v31  ;;  %vm246_vm15 = vweird.f32 %v225_v31 }
 0x385   :  { %v228_v33 = vsub.f32 1.0, %v227_v30 }
 0x386   :  { %v253_v50 = vor.u32 1.1754944e-38, %v252_v45  ;;  %vm251_vm2 = vcmp.eq.f32.partialorder %v250_v48, 8.507059e+37 }
 0x387   :  { %v229_v35 = vmul.f32 %v1233_v29, %v228_v33 }
 0x389   :  { %v230_v37 = vadd.f32 %v1233_v29, %v229_v35 }
 0x38a   :  { %v1235_v38 = vpop.eup %1234 }
 0x38b   :  { %v242_v40 = vmul.f32 %v1235_v38, %v225_v31  ;;  %v234_v41 = vsel %vm233_vm12, %v1233_v29, %v230_v37  ;;  %vm247_vm14 = vweird.f32 %v1235_v38  ;;  %v627_v13 = vpop.permute.xlu2 %626 }
 0x38c   :  { %v239_v42 = vsel %vm236_vm13, %v238_v39, %v234_v41  ;;  %vm248_vm1 = vmor %vm246_vm15, %vm247_vm14 }
 0x38d   :  { %v243_v43 = vsub.f32 1.0, %v242_v40  ;;  %v240_v44 = vmul.f32 %v1229_v19, %v239_v42 }
 0x38f   :  { %v244_v47 = vmul.f32 %v1235_v38, %v243_v43  ;;  %1145 = vmatmul.msk.f32.vlgmr.msra.gmra.mxu2 %vm207_vm9, %v240_v44 }
 0x391   :  { %v245_v49 = vadd.f32 %v1235_v38, %v244_v47 }
 0x393   :  { %v249_v51 = vsel %vm248_vm1, %v1235_v38, %v245_v49 }
 0x394   :  { %v254_v52 = vsel %vm251_vm2, %v253_v50, %v249_v51 }
 0x395   :  { %v255_v53 = vmul.f32 %v1231_v22, %v254_v52 }
 0x396   :  { %v298_v54 = vpop.permute.xlu0 %297 }
 0x397   :  { %1146 = vmatmul.msk.f32.gmra.mxu2 %vm207_vm9, %v255_v53  ;;  %1177 = vmatpush.xpose.msk.msra.mxu3 %vm175_vm8, %v298_v54 }
 0x398   :  { %1147 = vmatpush.xpose.msk.msrb.mxu2 %vm175_vm8, %v298_v54 }
 0x39b   :  { %1178 = vmatpush.xpose.msk.msra.mxu3 %vm175_vm8, %v296_v32 }
 0x39c   :  { %1148 = vmatpush.xpose.msk.msrb.mxu2 %vm175_vm8, %v296_v32 }
 0x39e   :  { %1150 = vmatmul.msk.f32.vlgmr.msra.gmra.mxu3 %vm175_vm8, %v294_v46  ;;  %v292_v57 = vpop.permute.xlu0 %291 }
 0x39f   :  { %1157 = vmatpush.xpose.msk.msrb.mxu3 %vm175_vm8, %v478_v56  ;;  %1149 = vmatmul.msk.f32.vlgmr.msrb.gmra.mxu2 %vm175_vm8, %v292_v57 }
 0x3a3   :  { %1158 = vmatpush.xpose.msk.msrb.mxu3 %vm175_vm8, %v476_v55 }
 0x3a6   :  { %1159 = vmatmul.msk.f32.vlgmr.msrb.gmra.mxu3 %vm175_vm8, %v472_v58  ;;  %v631_v59 = vpop.permute.xlu0 %630 }
 0x3a7   :  { %1165 = vmatpush.xpose.msk.msra.mxu1 %vm175_vm8, %v631_v59 }
 0x3ae   :  { %1160 = vmatmul.msk.f32.gmra.mxu3 %vm175_vm8, %v474_v60  ;;  %v629_v61 = vpop.permute.xlu0 %628 }
 0x3af   :  { %1166 = vmatpush.xpose.msk.msra.mxu1 %vm175_vm8, %v629_v61 }
 0x3b6   :  { %v625_v3 = vpop.permute.xlu0 %624 }
 0x412   :  { %v285_v62 = vpop.f32.mrf.mxu2 }
 0x413   :  { %1155 = vmatmul.msk.f32.vlgmr.msrb.gmra.mxu1 %vm175_vm8, %v285_v62 }
 0x41a   :  { %v288_v63 = vpop.f32.mrf.mxu2 }
 0x41b   :  { %1156 = vmatmul.msk.f32.gmra.mxu1 %vm175_vm8, %v288_v63 }
 0x421   :  { %v327_v1 = vpop.f32.mrf.mxu3 }
 0x422   :  { %v328_v5 = vadd.f32 %v327_v1, %v1471_v8  ;;  %v324_v6 = vpop.f32.mrf.mxu2 }
 0x423   :  { %v325_v7 = vadd.f32 %v324_v6, %v1464_v4  ;;  %1167 = vmatmul.msk.f32.vlgmr.msra.gmra.mxu1 %vm175_vm8, %v625_v3 }
 0x424   :  { %v333_v9 = vsel %vm207_vm9, %v328_v5, -inf }
 0x425   :  { %334 = vmax.xlane.f32.xlu1 %v333_v9  ;;  %v330_v10 = vsel %vm207_vm9, %v325_v7, -inf }
 0x426   :  { %331 = vmax.xlane.f32.xlu0 %v330_v10 }
 0x429   :  { %v504_v11 = vpop.f32.mrf.mxu3 }
 0x42a   :  { %v505_v14 = vadd.f32 %v504_v11, %v1464_v4 }
 0x42b   :  { %1168 = vmatmul.msk.f32.gmra.mxu1 %vm175_vm8, %v627_v13 }
 0x42c   :  { %v510_v15 = vsel %vm207_vm9, %v505_v14, -inf }
 0x42e   :  { %511 = vmax.xlane.f32.xlu0 %v510_v15 }
 0x431   :  { %v507_v17 = vpop.f32.mrf.mxu3 }
 0x432   :  { %v508_v18 = vadd.f32 %v507_v17, %v1471_v8 }
 0x434   :  { %v513_v19 = vsel %vm207_vm9, %v508_v18, -inf }
 0x435   :  { %514 = vmax.xlane.f32.xlu1 %v513_v19 }
 0x490   :  { %v1511_v20 = vpop.f32.mrf.mxu1 }
 0x498   :  { %v1513_v21 = vpop.f32.mrf.mxu1  ;;  %v335_v25 = vpop.xlane.xlu1 %334 }
 0x499   :  { %v332_v22 = vpop.xlane.xlu0 %331  ;;  %v337_v29 = vsub.f32 %v328_v5, %v335_v25 }
 0x49a   :  { %v336_v23 = vsub.f32 %v325_v7, %v332_v22 }
 0x49b   :  { %v340_v35 = vmul.f32 1.442695, %v337_v29 }
 0x49c   :  { %v338_v24 = vmul.f32 1.442695, %v336_v23 }
 0x49e   :  { %1236 = vpow2.f32 %v338_v24 }
 0x4a0   :  { %v657_v26 = vpop.f32.mrf.mxu1 }
 0x4a1   :  { %v658_v27 = vadd.f32 %v657_v26, %v1464_v4  ;;  %v512_v28 = vpop.xlane.xlu0 %511 }
 0x4a2   :  { %v516_v30 = vsub.f32 %v505_v14, %v512_v28 }
 0x4a3   :  { %v663_v31 = vsel %vm207_vm9, %v658_v27, -inf }
 0x4a4   :  { %v1517_v32 = vpop.eup %1236  ;;  %v518_v33 = vmul.f32 1.442695, %v516_v30  ;;  %664 = vmax.xlane.f32.xlu2 %v663_v31 }
 0x4a5   :  { %v342_v34 = vsel %vm207_vm9, %v1517_v32, 0.0 }
 0x4a6   :  { %1238 = vpow2.f32 %v518_v33  ;;  %343 = vadd.xlane.f32.xlu0 %v342_v34 }
 0x4a7   :  { %1240 = vpow2.f32 %v340_v35 }
 0x4a8   :  { %v515_v36 = vpop.xlane.xlu1 %514  ;;  %v660_v37 = vpop.f32.mrf.mxu1 }
 0x4a9   :  { %v517_v38 = vsub.f32 %v508_v18, %v515_v36  ;;  %v661_v4 = vadd.f32 %v660_v37, %v1471_v8 }
 0x4ab   :  { %v520_v39 = vmul.f32 1.442695, %v517_v38  ;;  %v666_v40 = vsel %vm207_vm9, %v661_v4, -inf }
 0x4ac   :  { %v1523_v41 = vpop.eup %1238  ;;  %667 = vmax.xlane.f32.xlu2 %v666_v40 }
 0x4ad   :  { %1242 = vpow2.f32 %v520_v39  ;;  %v522_v42 = vsel %vm207_vm9, %v1523_v41, 0.0  ;;  %v1527_v43 = vpop.eup %1240 }
 0x4ae   :  { %523 = vadd.xlane.f32.xlu0 %v522_v42  ;;  %v345_v45 = vsel %vm207_vm9, %v1527_v43, 0.0 }
 0x4b3   :  { %v1529_v44 = vpop.eup %1242 }
 0x4b4   :  { %346 = vadd.xlane.f32.xlu2 %v345_v45  ;;  %v525_v8 = vsel %vm207_vm9, %v1529_v44, 0.0 }
 0x4b6   :  { %526 = vadd.xlane.f32.xlu0 %v525_v8 }
 0x4ca   :  { %1210 = vrot.lane.b32.xlu0 %v1475_v12, %s1315_s21 }
 0x4cc   :  { %1200 = vrot.lane.b32.xlu2 %v1475_v12, %s1316_s6 }
 0x517   :  { %v665_v46 = vpop.xlane.xlu2 %664 }
 0x518   :  { %v669_v47 = vsub.f32 %v658_v27, %v665_v46 }
 0x519   :  { %v344_v48 = vpop.xlane.xlu0 %343 }
 0x51a   :  { %v671_v49 = vmul.f32 1.442695, %v669_v47  ;;  %1244 = vrcp.f32 %v344_v48  ;;  %v359_v3 = vand.u32 2147483648, %v344_v48  ;;  %vm353_vm4 = vweird.f32 %v344_v48 }
 0x51b   :  { %v357_v5 = vand.u32 2147483647, %v344_v48 }
 0x51c   :  { %1246 = vpow2.f32 %v671_v49  ;;  %v360_v11 = vor.u32 1.1754944e-38, %v359_v3 }
 0x51d   :  { %vm358_vm6 = vcmp.eq.f32.partialorder %v357_v5, 8.507059e+37 }
 0x51f   :  { %v668_v50 = vpop.xlane.xlu2 %667 }
 0x520   :  { %v1245_v51 = vpop.eup %1244  ;;  %v670_v52 = vsub.f32 %v661_v4, %v668_v50 }
 0x521   :  { %v349_v53 = vmul.f32 %v1245_v51, %v344_v48  ;;  %v1537_v54 = vpop.xlane.xlu0 %523  ;;  %vm354_vm3 = vweird.f32 %v1245_v51 }
 0x522   :  { %v1539_v55 = vpop.eup %1246  ;;  %v673_v56 = vmul.f32 1.442695, %v670_v52  ;;  %1248 = vrcp.f32 %v1537_v54  ;;  %vm355_vm5 = vmor %vm353_vm4, %vm354_vm3  ;;  %vm533_vm14 = vweird.f32 %v1537_v54  ;;  %v537_v37 = vand.u32 2147483647, %v1537_v54 }
 0x523   :  { %v350_v57 = vsub.f32 1.0, %v349_v53  ;;  %v675_v58 = vsel %vm207_vm9, %v1539_v55, 0.0 }
 0x524   :  { %1250 = vpow2.f32 %v673_v56  ;;  %676 = vadd.xlane.f32.xlu1 %v675_v58  ;;  %vm538_vm1 = vcmp.eq.f32.partialorder %v537_v37, 8.507059e+37  ;;  %v165_v58 = vld [vmem:[%s1741_s8 + $0x10] sm:$0xff] }
 0x525   :  { %v351_v59 = vmul.f32 %v1245_v51, %v350_v57 }
 0x527   :  { %v347_v60 = vpop.xlane.xlu2 %346  ;;  %v352_v62 = vadd.f32 %v1245_v51, %v351_v59 }
 0x528   :  { %1252 = vrcp.f32 %v347_v60  ;;  %v1249_v61 = vpop.eup %1248  ;;  %v374_v23 = vand.u32 2147483648, %v347_v60  ;;  %v372_v27 = vand.u32 2147483647, %v347_v60  ;;  %vm368_vm10 = vweird.f32 %v347_v60 }
 0x529   :  { %v1544_v63 = vpop.xlane.xlu0 %526  ;;  %v356_v7 = vsel %vm355_vm5, %v1245_v51, %v352_v62  ;;  %v529_v9 = vmul.f32 %v1249_v61, %v1537_v54  ;;  %vm534_vm13 = vweird.f32 %v1249_v61 }
 0x52a   :  { %v1546_v1 = vpop.eup %1250  ;;  %1254 = vrcp.f32 %v1544_v63  ;;  %v361_v15 = vsel %vm358_vm6, %v360_v11, %v356_v7  ;;  %v375_v31 = vor.u32 1.1754944e-38, %v374_v23  ;;  %vm373_vm12 = vcmp.eq.f32.partialorder %v372_v27, 8.507059e+37  ;;  %vm535_vm15 = vmor %vm533_vm14, %vm534_vm13 }
 0x52b   :  { %v678_v6 = vsel %vm207_vm9, %v1546_v1, 0.0  ;;  %v530_v18 = vsub.f32 1.0, %v529_v9  ;;  %v362_v26 = vmul.f32 %v1517_v32, %v361_v15  ;;  %v539_v32 = vand.u32 2147483648, %v1537_v54 }
 0x52c   :  { %679 = vadd.xlane.f32.xlu1 %v678_v6  ;;  %v554_v48 = vand.u32 2147483648, %v1544_v63  ;;  %vm548_vm3 = vweird.f32 %v1544_v63  ;;  %v552_v49 = vand.u32 2147483647, %v1544_v63 }
 0x52d   :  { %v531_v28 = vmul.f32 %v1249_v61, %v530_v18  ;;  %v540_v45 = vor.u32 1.1754944e-38, %v539_v32  ;;  %v1217_v32 = vld [vmem:[%s1742_s9] ss:$0 sm:$0xff] }
 0x52e   :  { %v1253_v10 = vpop.eup %1252  ;;  %v555_v51 = vor.u32 1.1754944e-38, %v554_v48  ;;  %vm553_vm5 = vcmp.eq.f32.partialorder %v552_v49, 8.507059e+37 }
 0x52f   :  { %v364_v13 = vmul.f32 %v1253_v10, %v347_v60  ;;  %v1201_v14 = vpop.permute.xlu2 %1200  ;;  %vm369_vm7 = vweird.f32 %v1253_v10  ;;  %v532_v35 = vadd.f32 %v1249_v61, %v531_v28 }
 0x530   :  { %v1202_v17 = vunpack.i.l.bf16 %v1201_v14  ;;  %v1255_v22 = vpop.eup %1254  ;;  %v1203_v24 = vunpack.i.h.bf16 %v1201_v14  ;;  %vm370_vm11 = vmor %vm368_vm10, %vm369_vm7 }
 0x531   :  { %v365_v19 = vsub.f32 1.0, %v364_v13  ;;  %v544_v29 = vmul.f32 %v1255_v22, %v1544_v63  ;;  %v536_v39 = vsel %vm535_vm15, %v1249_v61, %v532_v35  ;;  %vm549_vm2 = vweird.f32 %v1255_v22 }
 0x532   :  { %404 = vmatpush.msra.mxu2 %v1202_v17  ;;  %v541_v46 = vsel %vm538_vm1, %v540_v45, %v536_v39  ;;  %vm550_vm4 = vmor %vm548_vm3, %vm549_vm2 }
 0x533   :  { %v366_v25 = vmul.f32 %v1253_v10, %v365_v19  ;;  %v545_v36 = vsub.f32 1.0, %v544_v29  ;;  %v166_v29 = vld [vmem:[%s1741_s8 + $0x18] sm:$0xff] }
 0x534   :  { %405 = vmatpush.msra.mxu2 %v1203_v24 }
 0x535   :  { %1151 = vmatmul.msk.f32.vlgmr.msra.gmra.mxu2 %vm207_vm9, %v362_v26  ;;  %v367_v30 = vadd.f32 %v1253_v10, %v366_v25  ;;  %v546_v40 = vmul.f32 %v1255_v22, %v545_v36 }
 0x537   :  { %v371_v33 = vsel %vm370_vm11, %v1253_v10, %v367_v30  ;;  %v547_v47 = vadd.f32 %v1255_v22, %v546_v40 }
 0x538   :  { %v376_v34 = vsel %vm373_vm12, %v375_v31, %v371_v33 }
 0x539   :  { %v377_v38 = vmul.f32 %v1527_v43, %v376_v34  ;;  %v542_v43 = vmul.f32 %v1523_v41, %v541_v46  ;;  %v551_v50 = vsel %vm550_vm4, %v1255_v22, %v547_v47  ;;  %v164_v41 = vld [vmem:[%s1741_s8 + $0x8] sm:$0xff]  ;;  %s1320_s8 = smov 8  }
 0x53a   :  { %v556_v52 = vsel %vm553_vm5, %v555_v51, %v551_v50  ;;  %434 = vmatpush.msrb.mxu0 %v164_v41 }
 0x53b   :  { %v557_v53 = vmul.f32 %v1529_v44, %v556_v52 }
 0x53c   :  { %v1211_v4 = vpop.permute.xlu0 %1210  ;;  %614 = vmatpush.msra.mxu0 %v165_v58  ;;  %v841_v58 = vld [vmem:[%s1745_s12] sm:$0xff] }
 0x53d   :  { %v1212_v42 = vunpack.i.l.bf16 %v1211_v4  ;;  %1152 = vmatmul.msk.f32.gmra.mxu2 %vm207_vm9, %v377_v38  ;;  %v1213_v8 = vunpack.i.h.bf16 %v1211_v4 }
 0x53f   :  { %584 = vmatpush.msrb.mxu2 %v1212_v42 }
 0x541   :  { %585 = vmatpush.msrb.mxu2 %v1213_v8 }
 0x543   :  { %767 = vmatpush.msra.mxu2 %v166_v29  ;;  %v1220_v29 = vld [vmem:[%s1746_s13] ss:$0 sm:$0xff] }
 0x545   :  { %1205 = vrot.lane.b32.xlu1 %v1475_v12, %s1317_s22  ;;  %1161 = vmatmul.msk.f32.vlgmr.msrb.gmra.mxu2 %vm207_vm9, %v542_v43 }
 0x54d   :  { %1162 = vmatmul.msk.f32.gmra.mxu2 %vm207_vm9, %v557_v53 }
 0x597   :  { %v677_v54 = vpop.xlane.xlu1 %676 }
 0x598   :  { %1256 = vrcp.f32 %v677_v54  ;;  %v692_v3 = vand.u32 2147483648, %v677_v54  ;;  %vm686_vm7 = vweird.f32 %v677_v54  ;;  %v690_v5 = vand.u32 2147483647, %v677_v54 }
 0x59a   :  { %v693_v9 = vor.u32 1.1754944e-38, %v692_v3  ;;  %vm691_vm11 = vcmp.eq.f32.partialorder %v690_v5, 8.507059e+37 }
 0x59e   :  { %v1257_v57 = vpop.eup %1256 }
 0x59f   :  { %v680_v56 = vpop.xlane.xlu1 %679  ;;  %v682_v12 = vmul.f32 %v1257_v57, %v677_v54  ;;  %vm687_vm6 = vweird.f32 %v1257_v57 }
 0x5a0   :  { %1258 = vrcp.f32 %v680_v56  ;;  %vm688_vm10 = vmor %vm686_vm7, %vm687_vm6  ;;  %v707_v17 = vand.u32 2147483648, %v680_v56  ;;  %vm701_vm13 = vweird.f32 %v680_v56  ;;  %v705_v22 = vand.u32 2147483647, %v680_v56 }
 0x5a1   :  { %v683_v59 = vsub.f32 1.0, %v682_v12  ;;  %v842_v12 = vld [vmem:[%s1745_s12 + $0x8] sm:$0xff] }
 0x5a2   :  { %v708_v24 = vor.u32 1.1754944e-38, %v707_v17  ;;  %vm706_vm15 = vcmp.eq.f32.partialorder %v705_v22, 8.507059e+37 }
 0x5a3   :  { %v684_v60 = vmul.f32 %v1257_v57, %v683_v59 }
 0x5a5   :  { %v685_v62 = vadd.f32 %v1257_v57, %v684_v60 }
 0x5a6   :  { %v1259_v44 = vpop.eup %1258 }
 0x5a7   :  { %v697_v61 = vmul.f32 %v1259_v44, %v680_v56  ;;  %v689_v6 = vsel %vm688_vm10, %v1257_v57, %v685_v62  ;;  %vm702_vm12 = vweird.f32 %v1259_v44  ;;  %v844_v56 = vld [vmem:[%s1745_s12 + $0x18] sm:$0xff]  ;;  %v843_v57 = vld [vmem:[%s1745_s12 + $0x10] sm:$0xff] }
 0x5a8   :  { %v694_v11 = vsel %vm691_vm11, %v693_v9, %v689_v6  ;;  %vm703_vm14 = vmor %vm701_vm13, %vm702_vm12 }
 0x5a9   :  { %v698_v63 = vsub.f32 1.0, %v697_v61  ;;  %v695_v19 = vmul.f32 %v1539_v55, %v694_v11 }
 0x5ab   :  { %v699_v7 = vmul.f32 %v1259_v44, %v698_v63 }
 0x5ad   :  { %v700_v15 = vadd.f32 %v1259_v44, %v699_v7 }
 0x5af   :  { %v704_v23 = vsel %vm703_vm14, %v1259_v44, %v700_v15 }
 0x5b0   :  { %v709_v26 = vsel %vm706_vm15, %v708_v24, %v704_v23 }
 0x5b1   :  { %v710_v27 = vmul.f32 %v1546_v1, %v709_v26 }
 0x5b7   :  { %v1206_v10 = vpop.permute.xlu1 %1205 }
 0x5b8   :  { %v1207_v13 = vunpack.i.l.bf16 %v1206_v10  ;;  %v407_v14 = vpop.f32.mrf.mxu2  ;;  %v1208_v18 = vunpack.i.h.bf16 %v1206_v10 }
 0x5b9   :  { %1153 = vmatmul.msk.f32.vlgmr.msrb.gmra.mxu0 %vm175_vm8, %v407_v14  ;;  %v1218_v14 = vld [vmem:[%s1743_s10] ss:$0 sm:$0xff] }
 0x5ba   :  { %737 = vmatpush.msra.mxu3 %v1207_v13  ;;  %867 = vmatpush.msrb.mxu0 %v844_v56 }
 0x5bc   :  { %738 = vmatpush.msra.mxu3 %v1208_v18  ;;  %868 = vmatpush.msrb.mxu0 %v843_v57  ;;  %v1219_v18 = vld [vmem:[%s1744_s11] ss:$0 sm:$0xff] }
 0x5bd   :  { %1169 = vmatmul.msk.f32.vlgmr.msra.gmra.mxu3 %vm207_vm9, %v695_v19 }
 0x5be   :  { %869 = vmatpush.msrb.mxu0 %v842_v12 }
 0x5c0   :  { %v410_v25 = vpop.f32.mrf.mxu2  ;;  %870 = vmatpush.msrb.mxu0 %v841_v58 }
 0x5c1   :  { %1154 = vmatmul.msk.f32.gmra.mxu0 %vm175_vm8, %v410_v25 }
 0x5c5   :  { %1170 = vmatmul.msk.f32.gmra.mxu3 %vm207_vm9, %v710_v27 }
 0x5c8   :  { %v587_v28 = vpop.f32.mrf.mxu2 }
 0x5c9   :  { %1163 = vmatmul.msk.f32.vlgmr.msra.gmra.mxu0 %vm175_vm8, %v587_v28 }
 0x5d0   :  { %v590_v55 = vpop.f32.mrf.mxu2 }
 0x5d1   :  { %1164 = vmatmul.msk.f32.gmra.mxu0 %vm175_vm8, %v590_v55 }
 0x636   :  { %v436_v1 = vpop.f32.mrf.mxu0 }
 0x637   :  { %v466_v35 = vadd.f32 %v1511_v20, %v436_v1 }
 0x63e   :  { %v439_v33 = vpop.f32.mrf.mxu0 }
 0x63f   :  { %v469_v40 = vadd.f32 %v1513_v21, %v439_v33 }
 0x640   :  { %v740_v30 = vpop.f32.mrf.mxu3 }
 0x641   :  { %1171 = vmatmul.msk.f32.vlgmr.msra.gmra.mxu2 %vm175_vm8, %v740_v30 }
 0x646   :  { %v616_v34 = vpop.f32.mrf.mxu0 }
 0x647   :  { %v622_v36 = vadd.f32 %v616_v34, %v466_v35 }
 0x648   :  { %v743_v31 = vpop.f32.mrf.mxu3 }
 0x649   :  { %1172 = vmatmul.msk.f32.gmra.mxu2 %vm175_vm8, %v743_v31 }
 0x64e   :  { %v619_v39 = vpop.f32.mrf.mxu0 }
 0x64f   :  { %v623_v45 = vadd.f32 %v619_v39, %v469_v40 }
 0x6c4   :  { %v769_v37 = vpop.f32.mrf.mxu2 }
 0x6c5   :  { %v775_v38 = vadd.f32 %v769_v37, %v622_v36 }
 0x6c7   :  { %v781_v4 = vadd.f32 %v1217_v32, %v775_v38 }
 0x6c9   :  { %v1593_v42 = vadd.f32 %v781_v4, %v1409_v0 }
 0x6cb   :  { %v787_v8 = vsel %vm64_vm0, %v1593_v42, 0.0 }
 0x6cc   :  { %788 = vadd.xlane.f32.xlu2 %v787_v8  ;;  %v772_v20 = vpop.f32.mrf.mxu2 }
 0x6cd   :  { %v776_v46 = vadd.f32 %v772_v20, %v623_v45 }
 0x6cf   :  { %v782_v47 = vadd.f32 %v1217_v32, %v776_v46 }
 0x6d1   :  { %v1598_v48 = vadd.f32 %v782_v47, %v1417_v2 }
 0x6d3   :  { %v790_v43 = vsel %vm64_vm0, %v1598_v48, 0.0 }
 0x6d4   :  { %791 = vadd.xlane.f32.xlu0 %v790_v43 }
 0x73f   :  { %v789_v49 = vpop.xlane.xlu2 %788 }
 0x740   :  { %v793_v21 = vmul.f32 %v789_v49, %v1426_v16 }
 0x742   :  { %v795_v0 = vsub.f32 %v1593_v42, %v793_v21 }
 0x744   :  { %v797_v50 = vmul.f32 %v795_v0, %v795_v0 }
 0x746   :  { %v799_v51 = vsel %vm64_vm0, %v797_v50, 0.0 }
 0x747   :  { %800 = vadd.xlane.f32.xlu1 %v799_v51  ;;  %v792_v52 = vpop.xlane.xlu0 %791 }
 0x748   :  { %v794_v53 = vmul.f32 %v792_v52, %v1426_v16 }
 0x74a   :  { %v796_v54 = vsub.f32 %v1598_v48, %v794_v53 }
 0x74c   :  { %v798_v2 = vmul.f32 %v796_v54, %v796_v54 }
 0x74e   :  { %v802_v41 = vsel %vm64_vm0, %v798_v2, 0.0 }
 0x74f   :  { %803 = vadd.xlane.f32.xlu2 %v802_v41 }
 0x7ba   :  { %v801_v59 = vpop.xlane.xlu1 %800 }
 0x7bb   :  { %v805_v44 = vmul.f32 %v801_v59, %v1426_v16 }
 0x7bd   :  { %v807_v60 = vadd.f32 1e-05, %v805_v44 }
 0x7bf   :  { %1260 = vrsqrt.f32 %v807_v60  ;;  %vm815_vm1 = vweird.f32 %v807_v60 }
 0x7c2   :  { %v804_v61 = vpop.xlane.xlu2 %803 }
 0x7c3   :  { %v806_v62 = vmul.f32 %v804_v61, %v1426_v16 }
 0x7c5   :  { %v1261_v63 = vpop.eup %1260  ;;  %v808_v3 = vadd.f32 1e-05, %v806_v62 }
 0x7c6   :  { %v810_v5 = vmul.f32 %v1261_v63, %v807_v60  ;;  %vm816_vm8 = vweird.f32 %v1261_v63 }
 0x7c7   :  { %1262 = vrsqrt.f32 %v808_v3  ;;  %vm817_vm2 = vmor %vm815_vm1, %vm816_vm8  ;;  %vm825_vm4 = vweird.f32 %v808_v3 }
 0x7c8   :  { %v811_v6 = vmul.f32 %v1261_v63, %v810_v5 }
 0x7ca   :  { %v812_v7 = vmul.f32 0.5, %v811_v6 }
 0x7cc   :  { %v813_v9 = vsub.f32 1.5, %v812_v7 }
 0x7cd   :  { %v1263_v10 = vpop.eup %1262 }
 0x7ce   :  { %v814_v11 = vmul.f32 %v1261_v63, %v813_v9  ;;  %v820_v13 = vmul.f32 %v1263_v10, %v808_v3  ;;  %vm826_vm3 = vweird.f32 %v1263_v10 }
 0x7cf   :  { %vm827_vm5 = vmor %vm825_vm4, %vm826_vm3 }
 0x7d0   :  { %v818_v15 = vsel %vm817_vm2, %v1261_v63, %v814_v11  ;;  %v821_v17 = vmul.f32 %v1263_v10, %v820_v13 }
 0x7d1   :  { %v829_v16 = vmul.f32 %v818_v15, %v795_v0 }
 0x7d2   :  { %v822_v19 = vmul.f32 0.5, %v821_v17 }
 0x7d3   :  { %v834_v22 = vmul.f32 %v1218_v14, %v829_v16 }
 0x7d4   :  { %v823_v23 = vsub.f32 1.5, %v822_v19 }
 0x7d5   :  { %v839_v24 = vadd.f32 %v1219_v18, %v834_v22 }
 0x7d6   :  { %v824_v25 = vmul.f32 %v1263_v10, %v823_v23 }
 0x7d7   :  { %1173 = vmatmul.msk.f32.vlgmr.msrb.gmra.mxu0 %vm64_vm0, %v839_v24 }
 0x7d8   :  { %v828_v26 = vsel %vm827_vm5, %v1263_v10, %v824_v25 }
 0x7d9   :  { %v830_v27 = vmul.f32 %v828_v26, %v796_v54 }
 0x7db   :  { %v835_v28 = vmul.f32 %v1218_v14, %v830_v27 }
 0x7dd   :  { %v840_v55 = vadd.f32 %v1219_v18, %v835_v28 }
 0x7df   :  { %1174 = vmatmul.msk.f32.gmra.mxu0 %vm64_vm0, %v840_v55 }
 0x854   :  { %v872_v30 = vpop.f32.mrf.mxu0 }
 0x855   :  { %v1633_v31 = vadd.f32 %v1220_v29, %v872_v30 }
 0x857   :  { %v1636_v1 = vmul.f32 0.70710677, %v1633_v31 }
 0x859   :  { %v882_v33 = vand.u32 2147483647, %v1636_v1  ;;  %vm948_vm8 = vcmp.ge.f32.partialorder %v1636_v1, 0.0  ;;  %v959_v1 = vld [vmem:[%s1736_s3 + $0x8] sm:$0xff] }
 0x85b   :  { %v884_v34 = vmul.f32 0.3275911, %v882_v33  ;;  %v936_v52 = vsub.f32 0.0, %v882_v33 }
 0x85c   :  { %v875_v35 = vpop.f32.mrf.mxu0 }
 0x85d   :  { %v886_v36 = vadd.f32 1.0, %v884_v34  ;;  %v1639_v32 = vadd.f32 %v1220_v29, %v875_v35  ;;  %v938_v12 = vmul.f32 %v936_v52, %v882_v33  ;;  %v1083_v52 = vld [vmem:[%s1747_s14 + $0x48] sm:$0xff] }
 0x85f   :  { %1264 = vrcp.f32 %v886_v36  ;;  %v1642_v37 = vmul.f32 0.70710677, %v1639_v32  ;;  %v899_v20 = vand.u32 2147483648, %v886_v36  ;;  %v897_v47 = vand.u32 2147483647, %v886_v36 }
 0x860   :  { %vm893_vm7 = vweird.f32 %v886_v36  ;;  %v940_v62 = vmul.f32 1.442695, %v938_v12 }
 0x861   :  { %v883_v38 = vand.u32 2147483647, %v1642_v37  ;;  %v900_v49 = vor.u32 1.1754944e-38, %v899_v20  ;;  %vm898_vm11 = vcmp.eq.f32.partialorder %v897_v47, 8.507059e+37  ;;  %vm949_vm1 = vcmp.ge.f32.partialorder %v1642_v37, 0.0  ;;  %v1088_v20 = vld [vmem:[%s1747_s14 + $0x70] sm:$0xff] }
 0x862   :  { %v1086_v47 = vld [vmem:[%s1747_s14 + $0x60] sm:$0xff] }
 0x863   :  { %v885_v4 = vmul.f32 0.3275911, %v883_v38  ;;  %v937_v3 = vsub.f32 0.0, %v883_v38 }
 0x865   :  { %v1265_v39 = vpop.eup %1264  ;;  %v887_v45 = vadd.f32 1.0, %v885_v4  ;;  %v939_v10 = vmul.f32 %v937_v3, %v883_v38 }
 0x866   :  { %v889_v40 = vmul.f32 %v1265_v39, %v886_v36  ;;  %vm894_vm6 = vweird.f32 %v1265_v39  ;;  %v879_v36 = vmul.f32 0.5, %v1639_v32  ;;  %v989_v32 = vlaneseq }
 0x867   :  { %1266 = vrcp.f32 %v887_v45  ;;  %vm895_vm10 = vmor %vm893_vm7, %vm894_vm6  ;;  %v914_v2 = vand.u32 2147483648, %v887_v45  ;;  %v912_v57 = vand.u32 2147483647, %v887_v45  ;;  %vm908_vm13 = vweird.f32 %v887_v45 }
 0x868   :  { %v890_v8 = vsub.f32 1.0, %v889_v40  ;;  %1268 = vpow2.f32 %v940_v62  ;;  %v942_v17 = vmul.f32 1.442695, %v939_v10  ;;  %v990_v37 = vand.u32 127, %v989_v32 }
 0x869   :  { %v915_v44 = vor.u32 1.1754944e-38, %v914_v2  ;;  %vm913_vm15 = vcmp.eq.f32.partialorder %v912_v57, 8.507059e+37  ;;  %v1081_v57 = vld [vmem:[%s1747_s14 + $0x38] sm:$0xff] }
 0x86a   :  { %v891_v46 = vmul.f32 %v1265_v39, %v890_v8  ;;  %1270 = vpow2.f32 %v942_v17  ;;  %v958_v8 = vld [vmem:[%s1736_s3] sm:$0xff]  ;;  %vm991_vm2 = vcmp.eq.s32.totalorder %v990_v37, 0  ;;  %s1125_s3 = sshll.u32 %s1318_s5, 4  ;;  %s1126_s3 = int_to_ptr.vmem [resolvable:$true] %s1125_s3 }
 0x86c   :  { %v892_v43 = vadd.f32 %v1265_v39, %v891_v46  ;;  %v1087_v46 = vld [vmem:[%s1747_s14 + $0x68] sm:$0xff] }
 0x86d   :  { %v1267_v21 = vpop.eup %1266 }
 0x86e   :  { %v896_v0 = vsel %vm895_vm10, %v1265_v39, %v892_v43  ;;  %v904_v50 = vmul.f32 %v1267_v21, %v887_v45  ;;  %vm909_vm12 = vweird.f32 %v1267_v21  ;;  %v1269_v19 = vpop.eup %1268  ;;  %v878_v39 = vmul.f32 0.5, %v1633_v31  ;;  %v1089_v31 = vld [vmem:[%s1747_s14 + $0x78] sm:$0xff] }
 0x86f   :  { %v901_v51 = vsel %vm898_vm11, %v900_v49, %v896_v0  ;;  %vm910_vm14 = vmor %vm908_vm13, %vm909_vm12  ;;  %1094 = vmatpush.msrb.mxu3 %v1089_v31 }
 0x870   :  { %v918_v53 = vmul.f32 1.0614054, %v901_v51  ;;  %v905_v54 = vsub.f32 1.0, %v904_v50  ;;  %v1271_v28 = vpop.eup %1270  ;;  %v1084_v50 = vld [vmem:[%s1747_s14 + $0x50] sm:$0xff] }
 0x871   :  { %1095 = vmatpush.msrb.mxu3 %v1088_v20 }
 0x872   :  { %v920_v41 = vadd.f32 -1.4531521, %v918_v53  ;;  %v906_v56 = vmul.f32 %v1267_v21, %v905_v54  ;;  %v1082_v54 = vld [vmem:[%s1747_s14 + $0x40] sm:$0xff] }
 0x873   :  { %1096 = vmatpush.msrb.mxu3 %v1087_v46 }
 0x874   :  { %v922_v58 = vmul.f32 %v920_v41, %v901_v51  ;;  %v907_v59 = vadd.f32 %v1267_v21, %v906_v56 }
 0x875   :  { %1097 = vmatpush.msrb.mxu3 %v1086_v47 }
 0x876   :  { %v924_v60 = vadd.f32 1.4214138, %v922_v58  ;;  %v911_v61 = vsel %vm910_vm14, %v1267_v21, %v907_v59  ;;  %v1085_v21 = vld [vmem:[%s1747_s14 + $0x58] sm:$0xff]  ;;  %v1080_v58 = vld [vmem:[%s1747_s14 + $0x30] sm:$0xff] }
 0x877   :  { %v916_v63 = vsel %vm913_vm15, %v915_v44, %v911_v61  ;;  %1098 = vmatpush.msrb.mxu3 %v1085_v21  ;;  %v1079_v44 = vld [vmem:[%s1747_s14 + $0x28] sm:$0xff]  ;;  %v1078_v61 = vld [vmem:[%s1747_s14 + $0x20] sm:$0xff] }
 0x878   :  { %v926_v5 = vmul.f32 %v924_v60, %v901_v51  ;;  %v919_v6 = vmul.f32 1.0614054, %v916_v63 }
 0x879   :  { %1099 = vmatpush.msrb.mxu3 %v1084_v50 }
 0x87a   :  { %v928_v7 = vadd.f32 -0.28449672, %v926_v5  ;;  %v921_v9 = vadd.f32 -1.4531521, %v919_v6  ;;  %v1077_v5 = vld [vmem:[%s1747_s14 + $0x18] sm:$0xff] }
 0x87b   :  { %1100 = vmatpush.msrb.mxu3 %v1083_v52 }
 0x87c   :  { %v930_v11 = vmul.f32 %v928_v7, %v901_v51  ;;  %v923_v13 = vmul.f32 %v921_v9, %v916_v63  ;;  %v1076_v7 = vld [vmem:[%s1747_s14 + $0x10] sm:$0xff] }
 0x87d   :  { %1101 = vmatpush.msrb.mxu3 %v1082_v54 }
 0x87e   :  { %v932_v14 = vadd.f32 0.2548296, %v930_v11  ;;  %v925_v15 = vadd.f32 1.4214138, %v923_v13  ;;  %v1075_v13 = vld [vmem:[%s1747_s14 + $0x8] sm:$0xff] }
 0x87f   :  { %1102 = vmatpush.msrb.mxu3 %v1081_v57 }
 0x880   :  { %v934_v16 = vmul.f32 %v932_v14, %v901_v51  ;;  %v927_v18 = vmul.f32 %v925_v15, %v916_v63  ;;  %v1074_v14 = vld [vmem:[%s1747_s14] sm:$0xff] }
 0x881   :  { %1103 = vmatpush.msrb.mxu3 %v1080_v58 }
 0x882   :  { %v929_v22 = vadd.f32 -0.28449672, %v927_v18  ;;  %v944_v23 = vmul.f32 %v1269_v19, %v934_v16 }
 0x883   :  { %1104 = vmatpush.msrb.mxu3 %v1079_v44 }
 0x884   :  { %v931_v24 = vmul.f32 %v929_v22, %v916_v63  ;;  %v946_v26 = vsub.f32 1.0, %v944_v23 }
 0x885   :  { %1105 = vmatpush.msrb.mxu3 %v1078_v61 }
 0x886   :  { %v933_v25 = vadd.f32 0.2548296, %v931_v24  ;;  %v950_v29 = vsub.f32 0.0, %v946_v26 }
 0x887   :  { %1106 = vmatpush.msrb.mxu3 %v1077_v5 }
 0x888   :  { %v935_v27 = vmul.f32 %v933_v25, %v916_v63  ;;  %v952_v34 = vsel %vm948_vm8, %v946_v26, %v950_v29 }
 0x889   :  { %v954_v4 = vadd.f32 1.0, %v952_v34  ;;  %1107 = vmatpush.msrb.mxu3 %v1076_v7 }
 0x88a   :  { %v945_v55 = vmul.f32 %v1271_v28, %v935_v27 }
 0x88b   :  { %v956_v45 = vmul.f32 %v954_v4, %v878_v39  ;;  %1108 = vmatpush.msrb.mxu3 %v1075_v13 }
 0x88c   :  { %v947_v30 = vsub.f32 1.0, %v945_v55 }
 0x88d   :  { %1109 = vmatpush.msrb.mxu3 %v1074_v14 }
 0x88e   :  { %v951_v33 = vsub.f32 0.0, %v947_v30 }
 0x890   :  { %v953_v35 = vsel %vm949_vm1, %v947_v30, %v951_v33 }
 0x891   :  { %v955_v38 = vadd.f32 1.0, %v953_v35 }
 0x893   :  { %v957_v40 = vmul.f32 %v955_v38, %v879_v36 }
 0x895   :  { %980 = vmatpush.msrb.mxu1 %v957_v40 }
 0x897   :  { %981 = vmatpush.msrb.mxu1 %v956_v45 }
 0x898   :  { %1175 = vmatmul.msk.f32.vlgmr.msrb.gmra.mxu1 %vm207_vm9, %v958_v8 }
 0x8a0   :  { %1176 = vmatmul.msk.f32.gmra.mxu1 %vm207_vm9, %v959_v1 }
 0x915   :  { %v983_v43 = vpop.f32.mrf.mxu1 }
 0x916   :  { %v1670_v49 = vsel %vm991_vm2, %v983_v43, %v956_v45 }
 0x917   :  { %v1676_v0 = vmul.f32 0.70710677, %v1670_v49  ;;  %v994_v58 = vmul.f32 0.5, %v1670_v49  ;;  %v1221_v49 = vld [vmem:[%s1748_s15] ss:$0 sm:$0xff]  ;;  %s1319_s15 = smov 128  }
 0x919   :  { %v998_v51 = vand.u32 2147483647, %v1676_v0  ;;  %vm1064_vm12 = vcmp.ge.f32.partialorder %v1676_v0, 0.0 }
 0x91b   :  { %v1000_v53 = vmul.f32 0.3275911, %v998_v51  ;;  %v1052_v22 = vsub.f32 0.0, %v998_v51 }
 0x91d   :  { %v1002_v2 = vadd.f32 1.0, %v1000_v53  ;;  %v986_v41 = vpop.f32.mrf.mxu1  ;;  %v1054_v28 = vmul.f32 %v1052_v22, %v998_v51 }
 0x91e   :  { %v1689_v56 = vsel %vm991_vm2, %v986_v41, %v957_v40 }
 0x91f   :  { %1272 = vrcp.f32 %v1002_v2  ;;  %v1695_v12 = vmul.f32 0.70710677, %v1689_v56  ;;  %v1015_v9 = vand.u32 2147483648, %v1002_v2  ;;  %v1013_v11 = vand.u32 2147483647, %v1002_v2 }
 0x920   :  { %vm1009_vm3 = vweird.f32 %v1002_v2  ;;  %v1056_v36 = vmul.f32 1.442695, %v1054_v28 }
 0x921   :  { %v999_v59 = vand.u32 2147483647, %v1695_v12  ;;  %v1016_v17 = vor.u32 1.1754944e-38, %v1015_v9  ;;  %vm1014_vm5 = vcmp.eq.f32.partialorder %v1013_v11, 8.507059e+37  ;;  %vm1065_vm13 = vcmp.ge.f32.partialorder %v1695_v12, 0.0 }
 0x923   :  { %v1001_v60 = vmul.f32 0.3275911, %v999_v59  ;;  %v1053_v39 = vsub.f32 0.0, %v999_v59 }
 0x925   :  { %v1273_v62 = vpop.eup %1272  ;;  %v1003_v3 = vadd.f32 1.0, %v1001_v60  ;;  %v1055_v31 = vmul.f32 %v1053_v39, %v999_v59 }
 0x926   :  { %v1005_v63 = vmul.f32 %v1273_v62, %v1002_v2  ;;  %vm1010_vm9 = vweird.f32 %v1273_v62 }
 0x927   :  { %1274 = vrcp.f32 %v1003_v3  ;;  %vm1011_vm4 = vmor %vm1009_vm3, %vm1010_vm9  ;;  %v1030_v27 = vand.u32 2147483648, %v1003_v3  ;;  %v1028_v29 = vand.u32 2147483647, %v1003_v3  ;;  %vm1024_vm7 = vweird.f32 %v1003_v3 }
 0x928   :  { %v1006_v6 = vsub.f32 1.0, %v1005_v63  ;;  %1276 = vpow2.f32 %v1056_v36  ;;  %v1058_v43 = vmul.f32 1.442695, %v1055_v31 }
 0x929   :  { %v1031_v35 = vor.u32 1.1754944e-38, %v1030_v27  ;;  %vm1029_vm11 = vcmp.eq.f32.partialorder %v1028_v29, 8.507059e+37 }
 0x92a   :  { %v1007_v10 = vmul.f32 %v1273_v62, %v1006_v6  ;;  %1278 = vpow2.f32 %v1058_v43  ;;  %v995_v6 = vmul.f32 0.5, %v1689_v56 }
 0x92c   :  { %v1008_v15 = vadd.f32 %v1273_v62, %v1007_v10 }
 0x92d   :  { %v1275_v16 = vpop.eup %1274 }
 0x92e   :  { %v1012_v18 = vsel %vm1011_vm4, %v1273_v62, %v1008_v15  ;;  %v1020_v23 = vmul.f32 %v1275_v16, %v1003_v3  ;;  %vm1025_vm6 = vweird.f32 %v1275_v16  ;;  %v1277_v21 = vpop.eup %1276 }
 0x92f   :  { %v1017_v19 = vsel %vm1014_vm5, %v1016_v17, %v1012_v18  ;;  %vm1026_vm10 = vmor %vm1024_vm7, %vm1025_vm6 }
 0x930   :  { %v1034_v24 = vmul.f32 1.0614054, %v1017_v19  ;;  %v1021_v25 = vsub.f32 1.0, %v1020_v23  ;;  %v1279_v60 = vpop.eup %1278 }
 0x932   :  { %v1036_v26 = vadd.f32 -1.4531521, %v1034_v24  ;;  %v1022_v55 = vmul.f32 %v1275_v16, %v1021_v25 }
 0x934   :  { %v1038_v30 = vmul.f32 %v1036_v26, %v1017_v19  ;;  %v1023_v33 = vadd.f32 %v1275_v16, %v1022_v55 }
 0x936   :  { %v1040_v34 = vadd.f32 1.4214138, %v1038_v30  ;;  %v1027_v38 = vsel %vm1026_vm10, %v1275_v16, %v1023_v33 }
 0x937   :  { %v1032_v40 = vsel %vm1029_vm11, %v1031_v35, %v1027_v38 }
 0x938   :  { %v1042_v4 = vmul.f32 %v1040_v34, %v1017_v19  ;;  %v1035_v45 = vmul.f32 1.0614054, %v1032_v40 }
 0x93a   :  { %v1044_v8 = vadd.f32 -0.28449672, %v1042_v4  ;;  %v1037_v1 = vadd.f32 -1.4531521, %v1035_v45 }
 0x93c   :  { %v1046_v32 = vmul.f32 %v1044_v8, %v1017_v19  ;;  %v1039_v37 = vmul.f32 %v1037_v1, %v1032_v40 }
 0x93e   :  { %v1048_v20 = vadd.f32 0.2548296, %v1046_v32  ;;  %v1041_v46 = vadd.f32 1.4214138, %v1039_v37 }
 0x940   :  { %v1050_v47 = vmul.f32 %v1048_v20, %v1017_v19  ;;  %v1043_v50 = vmul.f32 %v1041_v46, %v1032_v40 }
 0x942   :  { %v1060_v51 = vmul.f32 %v1277_v21, %v1050_v47  ;;  %v1045_v52 = vadd.f32 -0.28449672, %v1043_v50 }
 0x944   :  { %v1062_v53 = vsub.f32 1.0, %v1060_v51  ;;  %v1047_v54 = vmul.f32 %v1045_v52, %v1032_v40 }
 0x946   :  { %v1066_v2 = vsub.f32 0.0, %v1062_v53  ;;  %v1049_v41 = vadd.f32 0.2548296, %v1047_v54 }
 0x948   :  { %v1068_v57 = vsel %vm1064_vm12, %v1062_v53, %v1066_v2  ;;  %v1051_v44 = vmul.f32 %v1049_v41, %v1032_v40 }
 0x949   :  { %v1070_v59 = vadd.f32 1.0, %v1068_v57 }
 0x94a   :  { %v1061_v62 = vmul.f32 %v1279_v60, %v1051_v44 }
 0x94b   :  { %v1072_v61 = vmul.f32 %v1070_v59, %v994_v58 }
 0x94c   :  { %v1063_v63 = vsub.f32 1.0, %v1061_v62 }
 0x94d   :  { %1110 = vmatmul.f32.vlgmr.msrb.gmra.mxu3 %v1072_v61 }
 0x94e   :  { %v1067_v3 = vsub.f32 0.0, %v1063_v63 }
 0x950   :  { %v1069_v5 = vsel %vm1065_vm13, %v1063_v63, %v1067_v3 }
 0x951   :  { %v1071_v7 = vadd.f32 1.0, %v1069_v5 }
 0x953   :  { %v1073_v9 = vmul.f32 %v1071_v7, %v995_v6 }
 0x955   :  { %1113 = vmatmul.f32.gmra.mxu3 %v1073_v9 }
 0x9d0   :  { %v1111_v0 = vpop.f32.mrf.mxu3 }
 0x9d1   :  { %v1112_v10 = vadd.f32 %v1221_v49, %v1111_v0 }
 0x9d3   :  { %v1117_v11 = vadd.f32 %v1112_v10, %v1593_v42 }
 0x9d5   :  { %1119 = vst.msk [vmem:[#allocation2] sm:$0xff] %vm64_vm0, %v1117_v11 }
 0x9d8   :  { %v1114_v56 = vpop.f32.mrf.mxu3 }
 0x9d9   :  { %v1115_v12 = vadd.f32 %v1221_v49, %v1114_v56 }
 0x9db   :  { %v1118_v13 = vadd.f32 %v1115_v12, %v1598_v48 }
 0x9dd   :  { %1120 = vst.msk [vmem:[#allocation2 + $0x8] sm:$0xff] %vm64_vm0, %v1118_v13 }
 0x9de   :  { %1133 = dma.vmem_to_hbm [thread:$0]  %s1126_s3, 256, %s1128_s7, [#allocation3], %s1319_s15, %s1319_s15, %s1320_s8  }
 0x9df   :  { %1304 = dma.done.wait [#allocation3], 256  }
 0x9e0   :  { %1305 = vsyncadd [#allocation3], 4294967040 }
 0x9e1   :  { %1138 = vsyncpa [#allocation3], 1 }

</bundles_post_ra>
